<compile_context>
chip_gen: v7x
topology: tpu7x:2x2x1
jax: 0.10.0
libtpu: 0.0.40
codegen_flags: <defaults>
</compile_context>

<pallas_src>
import functools

import jax
import jax.numpy as jnp
import numpy as np
from jax.experimental import pallas as pl
from jax.experimental.pallas import tpu as pltpu


def _int_or_float_power(base, gamma):
    """base**gamma without float-power transcendentals when gamma is integral."""
    g = float(gamma)
    if g == 1.0:
        return base
    if g == 2.0:
        return base * base
    if g.is_integer() and 0.0 < g <= 8.0:
        r = base
        for _ in range(int(g) - 1):
            r = r * base
        return r
    # General float power; clamp away from 0 so exp(g*log(0)) cannot NaN.
    return jnp.exp(g * jnp.log(jnp.maximum(base, 1e-30)))


def _fast_recip(d):
    """Approx EUP reciprocal + one Newton step (~f32 accurate, off the VPU divide path)."""
    r = pl.reciprocal(d, approx=True)
    return r * (2.0 - d * r)


def _sigle_loss_kernel(out_ref, tgt_ref, stats_ref, *,
                       lo, off, hc, wh, alpha3, gamma3):
    """Accumulates per-class loss statistics for one (batch, W-split, W-tile) block.

    out_ref  : (1, C, H,  tw) raw logits; the H crop is applied in-kernel
    tgt_ref  : (1, C, Hc, tw) raw targets (argmax/one-hot computed in-kernel)
    stats_ref: (1, 1, 8, 128) f32 accumulator, resident across the W-tile axis:
        row 0: sum_p softmax_c * onehot_c          (intersection)
        row 1: sum_p softmax_c                     (-> fp = row1 - row0)
        row 2: sum_p onehot_c                      (-> fn = row2 - row0, class mask)
        row 3: sum_p focal_loss_element(c, p)
      (lane c holds class c; remaining rows/lanes stay zero)
    """
    j = pl.program_id(2)

    @pl.when(j == 0)
    def _init():
        stats_ref[...] = jnp.zeros_like(stats_ref)

    C = tgt_ref.shape[1]

    # ---- cropped per-class logits, in the target frame (Hc rows) ----
    # 8-aligned window read (no relayout) + explicit sublane rotation (XLU)
    # + offset-0 slice.  When the crop is already 8-aligned, no roll at all.
    xs = []
    for c in range(C):
        xw = out_ref[0, c, lo:lo + wh, :].astype(jnp.float32)     # (wh, tw)
        if off:
            xw = pltpu.roll(xw, shift=(wh - off) % wh, axis=0)    # rows [0,Hc) valid
        xs.append(xw[:hc, :])                                     # (Hc, tw)

    # ---- softmax over the class axis (elementwise across per-class slabs) ----
    m = xs[0]
    for c in range(1, C):
        m = jnp.maximum(m, xs[c])
    es = [jnp.exp(xs[c] - m) for c in range(C)]
    denom = es[0]
    for c in range(1, C):
        denom = denom + es[c]
    inv = _fast_recip(denom)

    # ---- argmax(targets, dim=C): max value; targets re-read per class ----
    tmax = tgt_ref[0, 0, :, :].astype(jnp.float32)
    for c in range(1, C):
        tmax = jnp.maximum(tmax, tgt_ref[0, c, :, :].astype(jnp.float32))

    # Lane-dense (8, 128) update slab: row = statistic, lane = class.
    rows = jax.lax.broadcasted_iota(jnp.int32, (8, 128), 0)
    cols = jax.lax.broadcasted_iota(jnp.int32, (8, 128), 1)
    row_masks = [(rows == s).astype(jnp.float32) for s in range(4)]

    upd = jnp.zeros((8, 128), jnp.float32)
    remaining = None
    for c in range(C):
        # one-hot(argmax) with first-max tie-breaking (matches torch.max).
        t_c = tgt_ref[0, c, :, :].astype(jnp.float32)
        is_max = (t_c >= tmax).astype(jnp.float32)
        if remaining is None:
            oh = is_max
            remaining = 1.0 - is_max
        else:
            oh = is_max * remaining
            remaining = remaining * (1.0 - is_max)

        x = xs[c]
        p = es[c] * inv                                   # softmax probability

        # Stable BCE-with-logits focal term:
        #   logpt = max(x,0) - x*oh + log(1 + u),  u = exp(-|x|)
        #   pt    = exp(-logpt) = [1 if sign(x) matches oh else u] / (1 + u)
        u = jnp.exp(-jnp.abs(x))
        one_plus_u = 1.0 + u
        logpt = jnp.maximum(x, 0.0) - x * oh + jnp.log(one_plus_u)
        sign_pos = (x >= 0.0).astype(jnp.float32)
        agree = sign_pos * oh + (1.0 - sign_pos) * (1.0 - oh)
        numer = u + agree * (1.0 - u)                     # 1 if agree else u
        pt = numer * _fast_recip(one_plus_u)
        focal_term = _int_or_float_power(1.0 - pt, gamma3)
        w = alpha3 * oh + (1.0 - alpha3) * (1.0 - oh)
        f_elem = focal_term * logpt * w

        inter = jnp.sum(p * oh, keepdims=True)            # (1, 1)
        sump = jnp.sum(p, keepdims=True)
        cnt = jnp.sum(oh, keepdims=True)
        fsum = jnp.sum(f_elem, keepdims=True)

        col_mask = (cols == c).astype(jnp.float32)
        upd = upd + (inter * row_masks[0] + sump * row_masks[1]
                     + cnt * row_masks[2] + fsum * row_masks[3]) * col_mask

    stats_ref[0, 0, :, :] += upd


def _choose_tile_width(W, C, H, Hc, out_isz, tgt_isz, vmem_cap):
    """Largest multiple-of-128 divisor of W whose estimated footprint fits VMEM."""
    def footprint(tw):
        blocks = 2 * C * tw * (H * out_isz + Hc * tgt_isz)   # double-buffered inputs
        slabs = 5 * C * Hc * tw * 4                          # xs/es lists + transients (f32)
        return blocks + slabs

    if W % 128 != 0:
        return W, footprint(W)            # unusual width: single full-W block
    budget = int(0.55 * vmem_cap)
    divisors = [128 * m for m in range(1, W // 128 + 1) if W % (128 * m) == 0]
    for tw in sorted(divisors, reverse=True):
        if footprint(tw) <= budget:
            return tw, footprint(tw)
    tw = min(divisors)                    # nothing fits: fall back to 128-wide tiles
    return tw, footprint(tw)


def sigle_loss(outputs, targets, hyp, *, crop=12, max_tile_w=None):
    """JAX/Pallas equivalent of SigleLoss(hyp, task='DA').forward(outputs, targets)."""
    alpha1 = float(hyp['alpha1'])
    gamma1 = float(hyp['gamma1'])
    alpha3 = float(hyp['alpha3'])
    gamma3 = float(hyp['gamma3'])
    beta1 = 1.0 - alpha1

    N, C, H, W = outputs.shape
    Nt, Ct, Hc, Wt = targets.shape
    assert (N, C, W) == (Nt, Ct, Wt) and Hc == H - 2 * crop, "shape mismatch"
    assert C <= 128, "class axis must fit in one lane tile"

    # 8-aligned crop window [lo, hi) and in-window offset of the first valid row.
    lo = (crop // 8) * 8
    hi = min(-((-(H - crop)) // 8) * 8, H)
    off = crop - lo
    wh = hi - lo

    # Generation-aware VMEM budget (v5e/v6e: 128 MiB, v7x: 64 MiB per core).
    try:
        vmem_cap = int(pltpu.get_tpu_info().vmem_capacity_bytes)
    except Exception:
        vmem_cap = 64 * 1024 * 1024       # conservative (v7x) default

    tw, est = _choose_tile_width(W, C, H, Hc,
                                 outputs.dtype.itemsize, targets.dtype.itemsize,
                                 vmem_cap)
    if max_tile_w is not None:            # test hook: force smaller lane tiles
        while (tw > max_tile_w and tw % 2 == 0 and (tw // 2) % 128 == 0
               and W % (tw // 2) == 0):
            tw //= 2

    n_w = W // tw
    n_split = 2 if (n_w % 2 == 0 and n_w >= 2) else 1   # feed both v7x TCs at small N
    n_j = n_w // n_split
    grid = (N, n_split, n_j)

    vmem_limit = int(min(0.85 * vmem_cap, max(2 * est, 32 * 1024 * 1024)))

    kernel = functools.partial(_sigle_loss_kernel, lo=lo, off=off, hc=Hc, wh=wh,
                               alpha3=alpha3, gamma3=gamma3)

    stats = pl.pallas_call(
        kernel,
        out_shape=jax.ShapeDtypeStruct((N, n_split, 8, 128), jnp.float32),
        grid_spec=pltpu.PrefetchScalarGridSpec(
            num_scalar_prefetch=0,
            grid=grid,
            in_specs=[
                pl.BlockSpec((1, C, H, tw),
                             lambda n, s, j: (n, 0, 0, s * n_j + j)),
                pl.BlockSpec((1, C, Hc, tw),
                             lambda n, s, j: (n, 0, 0, s * n_j + j)),
            ],
            out_specs=pl.BlockSpec((1, 1, 8, 128), lambda n, s, j: (n, s, 0, 0)),
        ),
        compiler_params=pltpu.CompilerParams(
            dimension_semantics=("parallel", "parallel", "arbitrary"),
            vmem_limit_bytes=vmem_limit),
    )(outputs, targets)

    # Tiny final per-class arithmetic in plain JAX (length C).
    tot = jnp.sum(stats, axis=(0, 1))        # (8, 128)
    inter = tot[0, :C]
    sump = tot[1, :C]
    cnt = tot[2, :C]
    fsum = tot[3, :C]
    fp = sump - inter                        # sum_p softmax * (1 - onehot)
    fn = cnt - inter                         # sum_p (1 - softmax) * onehot

    eps = 1e-7
    tversky_score = inter / jnp.maximum(inter + alpha1 * fp + beta1 * fn, eps)
    loss_c = (1.0 - tversky_score) * (cnt > 0).astype(jnp.float32)
    tversky_loss = jnp.mean(loss_c) ** gamma1

    # FocalLossSeg multiclass: sum over classes of per-class mean over all pixels.
    focal_loss = jnp.sum(fsum) / jnp.float32(N * Hc * W)

    total = focal_loss + tversky_loss
    # TODO(synk): PyTorch returns .item() (host floats) for the first two values
    # and moves seg with .cuda(); here all three stay as JAX scalars on-device.
    return focal_loss, tversky_loss, total


def _reference(outputs, targets, hyp):
    """Pure-jnp reference mirroring the PyTorch code path."""
    alpha1 = hyp['alpha1']; gamma1 = hyp['gamma1']
    alpha3 = hyp['alpha3']; gamma3 = hyp['gamma3']
    out = outputs[:, :, 12:-12, :].astype(jnp.float32)
    seg = jnp.argmax(targets, axis=1)
    N, C, Hc, W = out.shape
    P = Hc * W

    focal = 0.0
    for c in range(C):
        x = out[:, c]
        t = (seg == c).astype(jnp.float32)
        logpt = jnp.maximum(x, 0.0) - x * t + jnp.log(1.0 + jnp.exp(-jnp.abs(x)))
        pt = jnp.exp(-logpt)
        l = ((1.0 - pt) ** gamma3) * logpt * (alpha3 * t + (1 - alpha3) * (1 - t))
        focal = focal + jnp.mean(l)

    prob = jax.nn.softmax(out, axis=1)
    yp = prob.reshape(N, C, P)
    yt = jnp.transpose(jax.nn.one_hot(seg.reshape(N, P), C, dtype=jnp.float32),
                       (0, 2, 1))
    I = jnp.sum(yp * yt, axis=(0, 2))
    FP = jnp.sum(yp * (1 - yt), axis=(0, 2))
    FN = jnp.sum((1 - yp) * yt, axis=(0, 2))
    score = I / jnp.maximum(I + alpha1 * FP + (1 - alpha1) * FN, 1e-7)
    lc = (1.0 - score) * (jnp.sum(yt, axis=(0, 2)) > 0).astype(jnp.float32)
    tv = jnp.mean(lc) ** gamma1
    return focal, tv, focal + tv


if __name__ == "__main__":
    # hyper-parameters (deterministic, in-script; task='DA' branch)
    hyp = dict(alpha1=0.7, gamma1=1.0, alpha2=0.7, gamma2=1.0,
               alpha3=0.25, gamma3=2.0)

    key = jax.random.PRNGKey(0)
    k1, k2, k3, k4 = jax.random.split(key, 4)

    # Test 1: tiny width (W < 128 -> single full-W block, no split).
    N, C, H, W = 2, 3, 40, 16                 # crop 12:-12 -> Hc = 16
    Hc = H - 24
    outputs = jax.random.normal(k1, (N, C, H, W), dtype=jnp.float32)
    targets = jax.random.normal(k2, (N, C, Hc, W), dtype=jnp.float32)
    res = jax.block_until_ready(sigle_loss(outputs, targets, hyp))
    ref = _reference(outputs, targets, hyp)
    for a, b in zip(res, ref):
        np.testing.assert_allclose(np.asarray(a), np.asarray(b),
                                   rtol=1e-3, atol=1e-5)

    # Test 2: lane-dense width, forced tw=128 -> exercises the W-split
    # ("parallel") axis and accumulation across the W-tile ("arbitrary") axis.
    N2, C2, H2, W2 = 1, 2, 40, 512
    Hc2 = H2 - 24
    outputs2 = jax.random.normal(k3, (N2, C2, H2, W2), dtype=jnp.float32)
    targets2 = jax.random.normal(k4, (N2, C2, Hc2, W2), dtype=jnp.float32)
    res2 = jax.block_until_ready(sigle_loss(outputs2, targets2, hyp, max_tile_w=128))
    ref2 = _reference(outputs2, targets2, hyp)
    for a, b in zip(res2, ref2):
        np.testing.assert_allclose(np.asarray(a), np.asarray(b),
                                   rtol=1e-3, atol=1e-5)

    print("KERNEL_OK")
</pallas_src>

<mosaic_0001>
module attributes {stable_mosaic.version = 11 : i64} {
  func.func @_sigle_loss_kernel(%arg0: i32, %arg1: i32, %arg2: i32, %arg3: memref<1x3x40x16xf32, #tpu.memory_space<vmem>>, %arg4: memref<1x3x16x16xf32, #tpu.memory_space<vmem>>, %arg5: memref<1x1x8x128xf32, #tpu.memory_space<vmem>>) attributes {dimension_semantics = [#tpu.dimension_semantics<parallel>, #tpu.dimension_semantics<parallel>, #tpu.dimension_semantics<arbitrary>], iteration_bounds = array<i64: 2, 1, 1>, scalar_prefetch = 0 : i64, scratch_operands = 0 : i64, tpu.core_type = #tpu.core_type<tc>, window_params = [{transform_indices = @transform_0, window_bounds = array<i64: 1, 3, 40, 16>}, {transform_indices = @transform_1, window_bounds = array<i64: 1, 3, 16, 16>}, {transform_indices = @transform_2, window_bounds = array<i64: 1, 1, 8, 128>}]} {
    %c0_i32 = arith.constant 0 : i32
    %0 = arith.cmpi eq, %arg2, %c0_i32 : i32
    %1 = arith.extui %0 : i1 to i32
    %c0_i32_0 = arith.constant 0 : i32
    %2 = arith.cmpi ne, %1, %c0_i32_0 : i32
    scf.if %2 {
      %cst_98 = arith.constant 0.000000e+00 : f32
      %337 = vector.broadcast %cst_98 : f32 to vector<1x1x8x128xf32>
      %c0_99 = arith.constant 0 : index
      %c0_100 = arith.constant 0 : index
      %c0_101 = arith.constant 0 : index
      %c0_102 = arith.constant 0 : index
      %338 = vector.load %arg5[%c0_99, %c0_100, %c0_101, %c0_102] : memref<1x1x8x128xf32, #tpu.memory_space<vmem>>, vector<1x1x8x128xf32>
      tpu.vector_store %arg5[%c0_99, %c0_100, %c0_101, %c0_102], %337 {strides = array<i32>} : memref<1x1x8x128xf32, #tpu.memory_space<vmem>>, vector<1x1x8x128xf32>,
    } else {
    }
    %c0 = arith.constant 0 : index
    %c0_1 = arith.constant 0 : index
    %c8 = arith.constant 8 : index
    %c0_2 = arith.constant 0 : index
    %3 = vector.load %arg3[%c0, %c0_1, %c8, %c0_2] : memref<1x3x40x16xf32, #tpu.memory_space<vmem>>, vector<1x1x24x16xf32>
    %4 = vector.shape_cast %3 : vector<1x1x24x16xf32> to vector<24x16xf32>
    %c20_i32 = arith.constant 20 : i32
    %5 = tpu.dynamic_rotate %4 by %c20_i32 dim 0 : vector<24x16xf32>, i32 -> vector<24x16xf32>
    %6 = vector.extract_strided_slice %5 {offsets = [0, 0], sizes = [16, 16], strides = [1, 1]} : vector<24x16xf32> to vector<16x16xf32>
    %c0_3 = arith.constant 0 : index
    %c1 = arith.constant 1 : index
    %c8_4 = arith.constant 8 : index
    %c0_5 = arith.constant 0 : index
    %7 = vector.load %arg3[%c0_3, %c1, %c8_4, %c0_5] : memref<1x3x40x16xf32, #tpu.memory_space<vmem>>, vector<1x1x24x16xf32>
    %8 = vector.shape_cast %7 : vector<1x1x24x16xf32> to vector<24x16xf32>
    %c20_i32_6 = arith.constant 20 : i32
    %9 = tpu.dynamic_rotate %8 by %c20_i32_6 dim 0 : vector<24x16xf32>, i32 -> vector<24x16xf32>
    %10 = vector.extract_strided_slice %9 {offsets = [0, 0], sizes = [16, 16], strides = [1, 1]} : vector<24x16xf32> to vector<16x16xf32>
    %c0_7 = arith.constant 0 : index
    %c2 = arith.constant 2 : index
    %c8_8 = arith.constant 8 : index
    %c0_9 = arith.constant 0 : index
    %11 = vector.load %arg3[%c0_7, %c2, %c8_8, %c0_9] : memref<1x3x40x16xf32, #tpu.memory_space<vmem>>, vector<1x1x24x16xf32>
    %12 = vector.shape_cast %11 : vector<1x1x24x16xf32> to vector<24x16xf32>
    %c20_i32_10 = arith.constant 20 : i32
    %13 = tpu.dynamic_rotate %12 by %c20_i32_10 dim 0 : vector<24x16xf32>, i32 -> vector<24x16xf32>
    %14 = vector.extract_strided_slice %13 {offsets = [0, 0], sizes = [16, 16], strides = [1, 1]} : vector<24x16xf32> to vector<16x16xf32>
    %15 = arith.maximumf %6, %10 : vector<16x16xf32>
    %16 = arith.maximumf %15, %14 : vector<16x16xf32>
    %17 = arith.subf %6, %16 : vector<16x16xf32>
    %18 = math.exp %17 : vector<16x16xf32>
    %19 = arith.subf %10, %16 : vector<16x16xf32>
    %20 = math.exp %19 : vector<16x16xf32>
    %21 = arith.subf %14, %16 : vector<16x16xf32>
    %22 = math.exp %21 : vector<16x16xf32>
    %23 = arith.addf %18, %20 : vector<16x16xf32>
    %24 = arith.addf %23, %22 : vector<16x16xf32>
    %25 = tpu.reciprocal %24 {approx = true} : vector<16x16xf32> -> vector<16x16xf32>
    %26 = arith.mulf %24, %25 : vector<16x16xf32>
    %cst = arith.constant 2.000000e+00 : f32
    %27 = vector.broadcast %cst : f32 to vector<16x16xf32>
    %28 = arith.subf %27, %26 : vector<16x16xf32>
    %29 = arith.mulf %25, %28 : vector<16x16xf32>
    %c0_11 = arith.constant 0 : index
    %c0_12 = arith.constant 0 : index
    %c0_13 = arith.constant 0 : index
    %c0_14 = arith.constant 0 : index
    %30 = vector.load %arg4[%c0_11, %c0_12, %c0_13, %c0_14] : memref<1x3x16x16xf32, #tpu.memory_space<vmem>>, vector<1x1x16x16xf32>
    %31 = vector.shape_cast %30 : vector<1x1x16x16xf32> to vector<16x16xf32>
    %c0_15 = arith.constant 0 : index
    %c1_16 = arith.constant 1 : index
    %c0_17 = arith.constant 0 : index
    %c0_18 = arith.constant 0 : index
    %32 = vector.load %arg4[%c0_15, %c1_16, %c0_17, %c0_18] : memref<1x3x16x16xf32, #tpu.memory_space<vmem>>, vector<1x1x16x16xf32>
    %33 = vector.shape_cast %32 : vector<1x1x16x16xf32> to vector<16x16xf32>
    %34 = arith.maximumf %31, %33 : vector<16x16xf32>
    %c0_19 = arith.constant 0 : index
    %c2_20 = arith.constant 2 : index
    %c0_21 = arith.constant 0 : index
    %c0_22 = arith.constant 0 : index
    %35 = vector.load %arg4[%c0_19, %c2_20, %c0_21, %c0_22] : memref<1x3x16x16xf32, #tpu.memory_space<vmem>>, vector<1x1x16x16xf32>
    %36 = vector.shape_cast %35 : vector<1x1x16x16xf32> to vector<16x16xf32>
    %37 = arith.maximumf %34, %36 : vector<16x16xf32>
    %38 = tpu.iota {dimensions = array<i32: 0>} : vector<8x128xi32>
    %39 = tpu.iota {dimensions = array<i32: 1>} : vector<8x128xi32>
    %c0_i32_23 = arith.constant 0 : i32
    %40 = vector.broadcast %c0_i32_23 : i32 to vector<8x128xi32>
    %41 = arith.cmpi eq, %38, %40 : vector<8x128xi32>
    %42 = arith.extui %41 : vector<8x128xi1> to vector<8x128xi32>
    %43 = arith.sitofp %42 : vector<8x128xi32> to vector<8x128xf32>
    %c1_i32 = arith.constant 1 : i32
    %44 = vector.broadcast %c1_i32 : i32 to vector<8x128xi32>
    %45 = arith.cmpi eq, %38, %44 : vector<8x128xi32>
    %46 = arith.extui %45 : vector<8x128xi1> to vector<8x128xi32>
    %47 = arith.sitofp %46 : vector<8x128xi32> to vector<8x128xf32>
    %c2_i32 = arith.constant 2 : i32
    %48 = vector.broadcast %c2_i32 : i32 to vector<8x128xi32>
    %49 = arith.cmpi eq, %38, %48 : vector<8x128xi32>
    %50 = arith.extui %49 : vector<8x128xi1> to vector<8x128xi32>
    %51 = arith.sitofp %50 : vector<8x128xi32> to vector<8x128xf32>
    %c3_i32 = arith.constant 3 : i32
    %52 = vector.broadcast %c3_i32 : i32 to vector<8x128xi32>
    %53 = arith.cmpi eq, %38, %52 : vector<8x128xi32>
    %54 = arith.extui %53 : vector<8x128xi1> to vector<8x128xi32>
    %55 = arith.sitofp %54 : vector<8x128xi32> to vector<8x128xf32>
    %cst_24 = arith.constant 0.000000e+00 : f32
    %56 = vector.broadcast %cst_24 : f32 to vector<8x128xf32>
    %c0_25 = arith.constant 0 : index
    %c0_26 = arith.constant 0 : index
    %c0_27 = arith.constant 0 : index
    %c0_28 = arith.constant 0 : index
    %57 = vector.load %arg4[%c0_25, %c0_26, %c0_27, %c0_28] : memref<1x3x16x16xf32, #tpu.memory_space<vmem>>, vector<1x1x16x16xf32>
    %58 = vector.shape_cast %57 : vector<1x1x16x16xf32> to vector<16x16xf32>
    %59 = arith.cmpf oge, %58, %37 : vector<16x16xf32>
    %60 = arith.extui %59 : vector<16x16xi1> to vector<16x16xi32>
    %61 = arith.sitofp %60 : vector<16x16xi32> to vector<16x16xf32>
    %cst_29 = arith.constant 1.000000e+00 : f32
    %62 = vector.broadcast %cst_29 : f32 to vector<16x16xf32>
    %63 = arith.subf %62, %61 : vector<16x16xf32>
    %64 = arith.mulf %18, %29 : vector<16x16xf32>
    %65 = math.absf %6 : vector<16x16xf32>
    %cst_30 = arith.constant 0.000000e+00 : f32
    %66 = vector.broadcast %cst_30 : f32 to vector<16x16xf32>
    %67 = arith.subf %66, %65 : vector<16x16xf32>
    %68 = math.exp %67 : vector<16x16xf32>
    %cst_31 = arith.constant 1.000000e+00 : f32
    %69 = vector.broadcast %cst_31 : f32 to vector<16x16xf32>
    %70 = arith.addf %69, %68 : vector<16x16xf32>
    %cst_32 = arith.constant 0.000000e+00 : f32
    %71 = vector.broadcast %cst_32 : f32 to vector<16x16xf32>
    %72 = arith.maximumf %6, %71 : vector<16x16xf32>
    %73 = arith.mulf %6, %61 : vector<16x16xf32>
    %74 = arith.subf %72, %73 : vector<16x16xf32>
    %75 = math.log %70 : vector<16x16xf32>
    %76 = arith.addf %74, %75 : vector<16x16xf32>
    %cst_33 = arith.constant 0.000000e+00 : f32
    %77 = vector.broadcast %cst_33 : f32 to vector<16x16xf32>
    %78 = arith.cmpf oge, %6, %77 : vector<16x16xf32>
    %79 = arith.extui %78 : vector<16x16xi1> to vector<16x16xi32>
    %80 = arith.sitofp %79 : vector<16x16xi32> to vector<16x16xf32>
    %81 = arith.mulf %80, %61 : vector<16x16xf32>
    %cst_34 = arith.constant 1.000000e+00 : f32
    %82 = vector.broadcast %cst_34 : f32 to vector<16x16xf32>
    %83 = arith.subf %82, %80 : vector<16x16xf32>
    %cst_35 = arith.constant 1.000000e+00 : f32
    %84 = vector.broadcast %cst_35 : f32 to vector<16x16xf32>
    %85 = arith.subf %84, %61 : vector<16x16xf32>
    %86 = arith.mulf %83, %85 : vector<16x16xf32>
    %87 = arith.addf %81, %86 : vector<16x16xf32>
    %cst_36 = arith.constant 1.000000e+00 : f32
    %88 = vector.broadcast %cst_36 : f32 to vector<16x16xf32>
    %89 = arith.subf %88, %68 : vector<16x16xf32>
    %90 = arith.mulf %87, %89 : vector<16x16xf32>
    %91 = arith.addf %68, %90 : vector<16x16xf32>
    %92 = tpu.reciprocal %70 {approx = true} : vector<16x16xf32> -> vector<16x16xf32>
    %93 = arith.mulf %70, %92 : vector<16x16xf32>
    %cst_37 = arith.constant 2.000000e+00 : f32
    %94 = vector.broadcast %cst_37 : f32 to vector<16x16xf32>
    %95 = arith.subf %94, %93 : vector<16x16xf32>
    %96 = arith.mulf %92, %95 : vector<16x16xf32>
    %97 = arith.mulf %91, %96 : vector<16x16xf32>
    %cst_38 = arith.constant 1.000000e+00 : f32
    %98 = vector.broadcast %cst_38 : f32 to vector<16x16xf32>
    %99 = arith.subf %98, %97 : vector<16x16xf32>
    %100 = arith.mulf %99, %99 : vector<16x16xf32>
    %cst_39 = arith.constant 2.500000e-01 : f32
    %101 = vector.broadcast %cst_39 : f32 to vector<16x16xf32>
    %102 = arith.mulf %101, %61 : vector<16x16xf32>
    %cst_40 = arith.constant 1.000000e+00 : f32
    %103 = vector.broadcast %cst_40 : f32 to vector<16x16xf32>
    %104 = arith.subf %103, %61 : vector<16x16xf32>
    %cst_41 = arith.constant 7.500000e-01 : f32
    %105 = vector.broadcast %cst_41 : f32 to vector<16x16xf32>
    %106 = arith.mulf %105, %104 : vector<16x16xf32>
    %107 = arith.addf %102, %106 : vector<16x16xf32>
    %108 = arith.mulf %100, %76 : vector<16x16xf32>
    %109 = arith.mulf %108, %107 : vector<16x16xf32>
    %110 = arith.mulf %64, %61 : vector<16x16xf32>
    %111 = vector.shape_cast %110 : vector<16x16xf32> to vector<1x16x16xf32>
    %cst_42 = arith.constant dense<0.000000e+00> : vector<1xf32>
    %112 = vector.multi_reduction <add>, %111, %cst_42 [1, 2] : vector<1x16x16xf32> to vector<1xf32>
    %113 = vector.shape_cast %112 : vector<1xf32> to vector<1x1x1xf32>
    %114 = vector.extract %113[0, 0, 0] : f32 from vector<1x1x1xf32>
    %115 = vector.broadcast %114 : f32 to vector<1x1xf32>
    %116 = vector.shape_cast %64 : vector<16x16xf32> to vector<1x16x16xf32>
    %cst_43 = arith.constant dense<0.000000e+00> : vector<1xf32>
    %117 = vector.multi_reduction <add>, %116, %cst_43 [1, 2] : vector<1x16x16xf32> to vector<1xf32>
    %118 = vector.shape_cast %117 : vector<1xf32> to vector<1x1x1xf32>
    %119 = vector.extract %118[0, 0, 0] : f32 from vector<1x1x1xf32>
    %120 = vector.broadcast %119 : f32 to vector<1x1xf32>
    %121 = vector.shape_cast %61 : vector<16x16xf32> to vector<1x16x16xf32>
    %cst_44 = arith.constant dense<0.000000e+00> : vector<1xf32>
    %122 = vector.multi_reduction <add>, %121, %cst_44 [1, 2] : vector<1x16x16xf32> to vector<1xf32>
    %123 = vector.shape_cast %122 : vector<1xf32> to vector<1x1x1xf32>
    %124 = vector.extract %123[0, 0, 0] : f32 from vector<1x1x1xf32>
    %125 = vector.broadcast %124 : f32 to vector<1x1xf32>
    %126 = vector.shape_cast %109 : vector<16x16xf32> to vector<1x16x16xf32>
    %cst_45 = arith.constant dense<0.000000e+00> : vector<1xf32>
    %127 = vector.multi_reduction <add>, %126, %cst_45 [1, 2] : vector<1x16x16xf32> to vector<1xf32>
    %128 = vector.shape_cast %127 : vector<1xf32> to vector<1x1x1xf32>
    %129 = vector.extract %128[0, 0, 0] : f32 from vector<1x1x1xf32>
    %130 = vector.broadcast %129 : f32 to vector<1x1xf32>
    %c0_i32_46 = arith.constant 0 : i32
    %131 = vector.broadcast %c0_i32_46 : i32 to vector<8x128xi32>
    %132 = arith.cmpi eq, %39, %131 : vector<8x128xi32>
    %133 = arith.extui %132 : vector<8x128xi1> to vector<8x128xi32>
    %134 = arith.sitofp %133 : vector<8x128xi32> to vector<8x128xf32>
    %135 = vector.broadcast %115 : vector<1x1xf32> to vector<8x128xf32>
    %136 = arith.mulf %135, %43 : vector<8x128xf32>
    %137 = vector.broadcast %120 : vector<1x1xf32> to vector<8x128xf32>
    %138 = arith.mulf %137, %47 : vector<8x128xf32>
    %139 = arith.addf %136, %138 : vector<8x128xf32>
    %140 = vector.broadcast %125 : vector<1x1xf32> to vector<8x128xf32>
    %141 = arith.mulf %140, %51 : vector<8x128xf32>
    %142 = arith.addf %139, %141 : vector<8x128xf32>
    %143 = vector.broadcast %130 : vector<1x1xf32> to vector<8x128xf32>
    %144 = arith.mulf %143, %55 : vector<8x128xf32>
    %145 = arith.addf %142, %144 : vector<8x128xf32>
    %146 = arith.mulf %145, %134 : vector<8x128xf32>
    %147 = arith.addf %56, %146 : vector<8x128xf32>
    %c0_47 = arith.constant 0 : index
    %c1_48 = arith.constant 1 : index
    %c0_49 = arith.constant 0 : index
    %c0_50 = arith.constant 0 : index
    %148 = vector.load %arg4[%c0_47, %c1_48, %c0_49, %c0_50] : memref<1x3x16x16xf32, #tpu.memory_space<vmem>>, vector<1x1x16x16xf32>
    %149 = vector.shape_cast %148 : vector<1x1x16x16xf32> to vector<16x16xf32>
    %150 = arith.cmpf oge, %149, %37 : vector<16x16xf32>
    %151 = arith.extui %150 : vector<16x16xi1> to vector<16x16xi32>
    %152 = arith.sitofp %151 : vector<16x16xi32> to vector<16x16xf32>
    %153 = arith.mulf %152, %63 : vector<16x16xf32>
    %cst_51 = arith.constant 1.000000e+00 : f32
    %154 = vector.broadcast %cst_51 : f32 to vector<16x16xf32>
    %155 = arith.subf %154, %152 : vector<16x16xf32>
    %156 = arith.mulf %63, %155 : vector<16x16xf32>
    %157 = arith.mulf %20, %29 : vector<16x16xf32>
    %158 = math.absf %10 : vector<16x16xf32>
    %cst_52 = arith.constant 0.000000e+00 : f32
    %159 = vector.broadcast %cst_52 : f32 to vector<16x16xf32>
    %160 = arith.subf %159, %158 : vector<16x16xf32>
    %161 = math.exp %160 : vector<16x16xf32>
    %cst_53 = arith.constant 1.000000e+00 : f32
    %162 = vector.broadcast %cst_53 : f32 to vector<16x16xf32>
    %163 = arith.addf %162, %161 : vector<16x16xf32>
    %cst_54 = arith.constant 0.000000e+00 : f32
    %164 = vector.broadcast %cst_54 : f32 to vector<16x16xf32>
    %165 = arith.maximumf %10, %164 : vector<16x16xf32>
    %166 = arith.mulf %10, %153 : vector<16x16xf32>
    %167 = arith.subf %165, %166 : vector<16x16xf32>
    %168 = math.log %163 : vector<16x16xf32>
    %169 = arith.addf %167, %168 : vector<16x16xf32>
    %cst_55 = arith.constant 0.000000e+00 : f32
    %170 = vector.broadcast %cst_55 : f32 to vector<16x16xf32>
    %171 = arith.cmpf oge, %10, %170 : vector<16x16xf32>
    %172 = arith.extui %171 : vector<16x16xi1> to vector<16x16xi32>
    %173 = arith.sitofp %172 : vector<16x16xi32> to vector<16x16xf32>
    %174 = arith.mulf %173, %153 : vector<16x16xf32>
    %cst_56 = arith.constant 1.000000e+00 : f32
    %175 = vector.broadcast %cst_56 : f32 to vector<16x16xf32>
    %176 = arith.subf %175, %173 : vector<16x16xf32>
    %cst_57 = arith.constant 1.000000e+00 : f32
    %177 = vector.broadcast %cst_57 : f32 to vector<16x16xf32>
    %178 = arith.subf %177, %153 : vector<16x16xf32>
    %179 = arith.mulf %176, %178 : vector<16x16xf32>
    %180 = arith.addf %174, %179 : vector<16x16xf32>
    %cst_58 = arith.constant 1.000000e+00 : f32
    %181 = vector.broadcast %cst_58 : f32 to vector<16x16xf32>
    %182 = arith.subf %181, %161 : vector<16x16xf32>
    %183 = arith.mulf %180, %182 : vector<16x16xf32>
    %184 = arith.addf %161, %183 : vector<16x16xf32>
    %185 = tpu.reciprocal %163 {approx = true} : vector<16x16xf32> -> vector<16x16xf32>
    %186 = arith.mulf %163, %185 : vector<16x16xf32>
    %cst_59 = arith.constant 2.000000e+00 : f32
    %187 = vector.broadcast %cst_59 : f32 to vector<16x16xf32>
    %188 = arith.subf %187, %186 : vector<16x16xf32>
    %189 = arith.mulf %185, %188 : vector<16x16xf32>
    %190 = arith.mulf %184, %189 : vector<16x16xf32>
    %cst_60 = arith.constant 1.000000e+00 : f32
    %191 = vector.broadcast %cst_60 : f32 to vector<16x16xf32>
    %192 = arith.subf %191, %190 : vector<16x16xf32>
    %193 = arith.mulf %192, %192 : vector<16x16xf32>
    %cst_61 = arith.constant 2.500000e-01 : f32
    %194 = vector.broadcast %cst_61 : f32 to vector<16x16xf32>
    %195 = arith.mulf %194, %153 : vector<16x16xf32>
    %cst_62 = arith.constant 1.000000e+00 : f32
    %196 = vector.broadcast %cst_62 : f32 to vector<16x16xf32>
    %197 = arith.subf %196, %153 : vector<16x16xf32>
    %cst_63 = arith.constant 7.500000e-01 : f32
    %198 = vector.broadcast %cst_63 : f32 to vector<16x16xf32>
    %199 = arith.mulf %198, %197 : vector<16x16xf32>
    %200 = arith.addf %195, %199 : vector<16x16xf32>
    %201 = arith.mulf %193, %169 : vector<16x16xf32>
    %202 = arith.mulf %201, %200 : vector<16x16xf32>
    %203 = arith.mulf %157, %153 : vector<16x16xf32>
    %204 = vector.shape_cast %203 : vector<16x16xf32> to vector<1x16x16xf32>
    %cst_64 = arith.constant dense<0.000000e+00> : vector<1xf32>
    %205 = vector.multi_reduction <add>, %204, %cst_64 [1, 2] : vector<1x16x16xf32> to vector<1xf32>
    %206 = vector.shape_cast %205 : vector<1xf32> to vector<1x1x1xf32>
    %207 = vector.extract %206[0, 0, 0] : f32 from vector<1x1x1xf32>
    %208 = vector.broadcast %207 : f32 to vector<1x1xf32>
    %209 = vector.shape_cast %157 : vector<16x16xf32> to vector<1x16x16xf32>
    %cst_65 = arith.constant dense<0.000000e+00> : vector<1xf32>
    %210 = vector.multi_reduction <add>, %209, %cst_65 [1, 2] : vector<1x16x16xf32> to vector<1xf32>
    %211 = vector.shape_cast %210 : vector<1xf32> to vector<1x1x1xf32>
    %212 = vector.extract %211[0, 0, 0] : f32 from vector<1x1x1xf32>
    %213 = vector.broadcast %212 : f32 to vector<1x1xf32>
    %214 = vector.shape_cast %153 : vector<16x16xf32> to vector<1x16x16xf32>
    %cst_66 = arith.constant dense<0.000000e+00> : vector<1xf32>
    %215 = vector.multi_reduction <add>, %214, %cst_66 [1, 2] : vector<1x16x16xf32> to vector<1xf32>
    %216 = vector.shape_cast %215 : vector<1xf32> to vector<1x1x1xf32>
    %217 = vector.extract %216[0, 0, 0] : f32 from vector<1x1x1xf32>
    %218 = vector.broadcast %217 : f32 to vector<1x1xf32>
    %219 = vector.shape_cast %202 : vector<16x16xf32> to vector<1x16x16xf32>
    %cst_67 = arith.constant dense<0.000000e+00> : vector<1xf32>
    %220 = vector.multi_reduction <add>, %219, %cst_67 [1, 2] : vector<1x16x16xf32> to vector<1xf32>
    %221 = vector.shape_cast %220 : vector<1xf32> to vector<1x1x1xf32>
    %222 = vector.extract %221[0, 0, 0] : f32 from vector<1x1x1xf32>
    %223 = vector.broadcast %222 : f32 to vector<1x1xf32>
    %c1_i32_68 = arith.constant 1 : i32
    %224 = vector.broadcast %c1_i32_68 : i32 to vector<8x128xi32>
    %225 = arith.cmpi eq, %39, %224 : vector<8x128xi32>
    %226 = arith.extui %225 : vector<8x128xi1> to vector<8x128xi32>
    %227 = arith.sitofp %226 : vector<8x128xi32> to vector<8x128xf32>
    %228 = vector.broadcast %208 : vector<1x1xf32> to vector<8x128xf32>
    %229 = arith.mulf %228, %43 : vector<8x128xf32>
    %230 = vector.broadcast %213 : vector<1x1xf32> to vector<8x128xf32>
    %231 = arith.mulf %230, %47 : vector<8x128xf32>
    %232 = arith.addf %229, %231 : vector<8x128xf32>
    %233 = vector.broadcast %218 : vector<1x1xf32> to vector<8x128xf32>
    %234 = arith.mulf %233, %51 : vector<8x128xf32>
    %235 = arith.addf %232, %234 : vector<8x128xf32>
    %236 = vector.broadcast %223 : vector<1x1xf32> to vector<8x128xf32>
    %237 = arith.mulf %236, %55 : vector<8x128xf32>
    %238 = arith.addf %235, %237 : vector<8x128xf32>
    %239 = arith.mulf %238, %227 : vector<8x128xf32>
    %240 = arith.addf %147, %239 : vector<8x128xf32>
    %c0_69 = arith.constant 0 : index
    %c2_70 = arith.constant 2 : index
    %c0_71 = arith.constant 0 : index
    %c0_72 = arith.constant 0 : index
    %241 = vector.load %arg4[%c0_69, %c2_70, %c0_71, %c0_72] : memref<1x3x16x16xf32, #tpu.memory_space<vmem>>, vector<1x1x16x16xf32>
    %242 = vector.shape_cast %241 : vector<1x1x16x16xf32> to vector<16x16xf32>
    %243 = arith.cmpf oge, %242, %37 : vector<16x16xf32>
    %244 = arith.extui %243 : vector<16x16xi1> to vector<16x16xi32>
    %245 = arith.sitofp %244 : vector<16x16xi32> to vector<16x16xf32>
    %246 = arith.mulf %245, %156 : vector<16x16xf32>
    %247 = arith.mulf %22, %29 : vector<16x16xf32>
    %248 = math.absf %14 : vector<16x16xf32>
    %cst_73 = arith.constant 0.000000e+00 : f32
    %249 = vector.broadcast %cst_73 : f32 to vector<16x16xf32>
    %250 = arith.subf %249, %248 : vector<16x16xf32>
    %251 = math.exp %250 : vector<16x16xf32>
    %cst_74 = arith.constant 1.000000e+00 : f32
    %252 = vector.broadcast %cst_74 : f32 to vector<16x16xf32>
    %253 = arith.addf %252, %251 : vector<16x16xf32>
    %cst_75 = arith.constant 0.000000e+00 : f32
    %254 = vector.broadcast %cst_75 : f32 to vector<16x16xf32>
    %255 = arith.maximumf %14, %254 : vector<16x16xf32>
    %256 = arith.mulf %14, %246 : vector<16x16xf32>
    %257 = arith.subf %255, %256 : vector<16x16xf32>
    %258 = math.log %253 : vector<16x16xf32>
    %259 = arith.addf %257, %258 : vector<16x16xf32>
    %cst_76 = arith.constant 0.000000e+00 : f32
    %260 = vector.broadcast %cst_76 : f32 to vector<16x16xf32>
    %261 = arith.cmpf oge, %14, %260 : vector<16x16xf32>
    %262 = arith.extui %261 : vector<16x16xi1> to vector<16x16xi32>
    %263 = arith.sitofp %262 : vector<16x16xi32> to vector<16x16xf32>
    %264 = arith.mulf %263, %246 : vector<16x16xf32>
    %cst_77 = arith.constant 1.000000e+00 : f32
    %265 = vector.broadcast %cst_77 : f32 to vector<16x16xf32>
    %266 = arith.subf %265, %263 : vector<16x16xf32>
    %cst_78 = arith.constant 1.000000e+00 : f32
    %267 = vector.broadcast %cst_78 : f32 to vector<16x16xf32>
    %268 = arith.subf %267, %246 : vector<16x16xf32>
    %269 = arith.mulf %266, %268 : vector<16x16xf32>
    %270 = arith.addf %264, %269 : vector<16x16xf32>
    %cst_79 = arith.constant 1.000000e+00 : f32
    %271 = vector.broadcast %cst_79 : f32 to vector<16x16xf32>
    %272 = arith.subf %271, %251 : vector<16x16xf32>
    %273 = arith.mulf %270, %272 : vector<16x16xf32>
    %274 = arith.addf %251, %273 : vector<16x16xf32>
    %275 = tpu.reciprocal %253 {approx = true} : vector<16x16xf32> -> vector<16x16xf32>
    %276 = arith.mulf %253, %275 : vector<16x16xf32>
    %cst_80 = arith.constant 2.000000e+00 : f32
    %277 = vector.broadcast %cst_80 : f32 to vector<16x16xf32>
    %278 = arith.subf %277, %276 : vector<16x16xf32>
    %279 = arith.mulf %275, %278 : vector<16x16xf32>
    %280 = arith.mulf %274, %279 : vector<16x16xf32>
    %cst_81 = arith.constant 1.000000e+00 : f32
    %281 = vector.broadcast %cst_81 : f32 to vector<16x16xf32>
    %282 = arith.subf %281, %280 : vector<16x16xf32>
    %283 = arith.mulf %282, %282 : vector<16x16xf32>
    %cst_82 = arith.constant 2.500000e-01 : f32
    %284 = vector.broadcast %cst_82 : f32 to vector<16x16xf32>
    %285 = arith.mulf %284, %246 : vector<16x16xf32>
    %cst_83 = arith.constant 1.000000e+00 : f32
    %286 = vector.broadcast %cst_83 : f32 to vector<16x16xf32>
    %287 = arith.subf %286, %246 : vector<16x16xf32>
    %cst_84 = arith.constant 7.500000e-01 : f32
    %288 = vector.broadcast %cst_84 : f32 to vector<16x16xf32>
    %289 = arith.mulf %288, %287 : vector<16x16xf32>
    %290 = arith.addf %285, %289 : vector<16x16xf32>
    %291 = arith.mulf %283, %259 : vector<16x16xf32>
    %292 = arith.mulf %291, %290 : vector<16x16xf32>
    %293 = arith.mulf %247, %246 : vector<16x16xf32>
    %294 = vector.shape_cast %293 : vector<16x16xf32> to vector<1x16x16xf32>
    %cst_85 = arith.constant dense<0.000000e+00> : vector<1xf32>
    %295 = vector.multi_reduction <add>, %294, %cst_85 [1, 2] : vector<1x16x16xf32> to vector<1xf32>
    %296 = vector.shape_cast %295 : vector<1xf32> to vector<1x1x1xf32>
    %297 = vector.extract %296[0, 0, 0] : f32 from vector<1x1x1xf32>
    %298 = vector.broadcast %297 : f32 to vector<1x1xf32>
    %299 = vector.shape_cast %247 : vector<16x16xf32> to vector<1x16x16xf32>
    %cst_86 = arith.constant dense<0.000000e+00> : vector<1xf32>
    %300 = vector.multi_reduction <add>, %299, %cst_86 [1, 2] : vector<1x16x16xf32> to vector<1xf32>
    %301 = vector.shape_cast %300 : vector<1xf32> to vector<1x1x1xf32>
    %302 = vector.extract %301[0, 0, 0] : f32 from vector<1x1x1xf32>
    %303 = vector.broadcast %302 : f32 to vector<1x1xf32>
    %304 = vector.shape_cast %246 : vector<16x16xf32> to vector<1x16x16xf32>
    %cst_87 = arith.constant dense<0.000000e+00> : vector<1xf32>
    %305 = vector.multi_reduction <add>, %304, %cst_87 [1, 2] : vector<1x16x16xf32> to vector<1xf32>
    %306 = vector.shape_cast %305 : vector<1xf32> to vector<1x1x1xf32>
    %307 = vector.extract %306[0, 0, 0] : f32 from vector<1x1x1xf32>
    %308 = vector.broadcast %307 : f32 to vector<1x1xf32>
    %309 = vector.shape_cast %292 : vector<16x16xf32> to vector<1x16x16xf32>
    %cst_88 = arith.constant dense<0.000000e+00> : vector<1xf32>
    %310 = vector.multi_reduction <add>, %309, %cst_88 [1, 2] : vector<1x16x16xf32> to vector<1xf32>
    %311 = vector.shape_cast %310 : vector<1xf32> to vector<1x1x1xf32>
    %312 = vector.extract %311[0, 0, 0] : f32 from vector<1x1x1xf32>
    %313 = vector.broadcast %312 : f32 to vector<1x1xf32>
    %c2_i32_89 = arith.constant 2 : i32
    %314 = vector.broadcast %c2_i32_89 : i32 to vector<8x128xi32>
    %315 = arith.cmpi eq, %39, %314 : vector<8x128xi32>
    %316 = arith.extui %315 : vector<8x128xi1> to vector<8x128xi32>
    %317 = arith.sitofp %316 : vector<8x128xi32> to vector<8x128xf32>
    %318 = vector.broadcast %298 : vector<1x1xf32> to vector<8x128xf32>
    %319 = arith.mulf %318, %43 : vector<8x128xf32>
    %320 = vector.broadcast %303 : vector<1x1xf32> to vector<8x128xf32>
    %321 = arith.mulf %320, %47 : vector<8x128xf32>
    %322 = arith.addf %319, %321 : vector<8x128xf32>
    %323 = vector.broadcast %308 : vector<1x1xf32> to vector<8x128xf32>
    %324 = arith.mulf %323, %51 : vector<8x128xf32>
    %325 = arith.addf %322, %324 : vector<8x128xf32>
    %326 = vector.broadcast %313 : vector<1x1xf32> to vector<8x128xf32>
    %327 = arith.mulf %326, %55 : vector<8x128xf32>
    %328 = arith.addf %325, %327 : vector<8x128xf32>
    %329 = arith.mulf %328, %317 : vector<8x128xf32>
    %330 = arith.addf %240, %329 : vector<8x128xf32>
    %c0_90 = arith.constant 0 : index
    %c0_91 = arith.constant 0 : index
    %c0_92 = arith.constant 0 : index
    %c0_93 = arith.constant 0 : index
    %331 = vector.load %arg5[%c0_90, %c0_91, %c0_92, %c0_93] : memref<1x1x8x128xf32, #tpu.memory_space<vmem>>, vector<1x1x8x128xf32>
    %332 = vector.shape_cast %331 : vector<1x1x8x128xf32> to vector<8x128xf32>
    %333 = arith.addf %332, %330 : vector<8x128xf32>
    %c0_94 = arith.constant 0 : index
    %c0_95 = arith.constant 0 : index
    %c0_96 = arith.constant 0 : index
    %c0_97 = arith.constant 0 : index
    %334 = vector.load %arg5[%c0_94, %c0_95, %c0_96, %c0_97] : memref<1x1x8x128xf32, #tpu.memory_space<vmem>>, vector<1x1x8x128xf32>
    %335 = vector.shape_cast %334 : vector<1x1x8x128xf32> to vector<8x128xf32>
    %336 = vector.shape_cast %333 : vector<8x128xf32> to vector<1x1x8x128xf32>
    tpu.vector_store %arg5[%c0_94, %c0_95, %c0_96, %c0_97], %336 {strides = array<i32>} : memref<1x1x8x128xf32, #tpu.memory_space<vmem>>, vector<1x1x8x128xf32>,
    return
  }
  func.func @transform_0(%arg0: i32, %arg1: i32, %arg2: i32) -> (i32, i32, i32, i32) {
    %c1_i32 = arith.constant 1 : i32
    %0 = arith.muli %arg1, %c1_i32 : i32
    %1 = arith.addi %0, %arg2 : i32
    %c0_i32 = arith.constant 0 : i32
    %c0_i32_0 = arith.constant 0 : i32
    %c0_i32_1 = arith.constant 0 : i32
    return %arg0, %c0_i32, %c0_i32_0, %1 : i32, i32, i32, i32
  }
  func.func @transform_1(%arg0: i32, %arg1: i32, %arg2: i32) -> (i32, i32, i32, i32) {
    %c1_i32 = arith.constant 1 : i32
    %0 = arith.muli %arg1, %c1_i32 : i32
    %1 = arith.addi %0, %arg2 : i32
    %c0_i32 = arith.constant 0 : i32
    %c0_i32_0 = arith.constant 0 : i32
    %c0_i32_1 = arith.constant 0 : i32
    return %arg0, %c0_i32, %c0_i32_0, %1 : i32, i32, i32, i32
  }
  func.func @transform_2(%arg0: i32, %arg1: i32, %arg2: i32) -> (i32, i32, i32, i32) {
    %c0_i32 = arith.constant 0 : i32
    %c0_i32_0 = arith.constant 0 : i32
    %c0_i32_1 = arith.constant 0 : i32
    return %arg0, %arg1, %c0_i32, %c0_i32_0 : i32, i32, i32, i32
  }
}

</mosaic_0001>

<bundles_post_ra>
// kernel: tpu_custom_call.1
= control target key start
LH: loop header
LB: loop body
LE: loop exit
PB: predicated region body
PF: predicated region fallthrough
CT: control target
= control target key end

     0   :  { %7 = vsyncpa [#allocation3], 0  ;;  %s1577_s0 = inlined_call_operand.vmem [shape: f32[2,3,40,16], index: 0, kind: input, shape index: {}]   ;;  %s1578_s1 = inlined_call_operand.vmem [shape: f32[2,3,16,16], index: 1, kind: input, shape index: {}]   ;;  %s1579_s2 = inlined_call_operand.hbm [shape: f32[2,1,8,128], index: 2, kind: output, shape index: {}]  }
   0x1   :  { %9 = vsyncpa [#allocation3 + $0x1], 0  ;;  %s1133_s9 = smov 0   ;;  %s1135_s10 = smov 0  }
   0x2   :  { %s1137_s11 = smov 0   ;;  %s1139_s12 = smov 0  }
   0x3   :  { %s1141_s13 = smov 0   ;;  %s1143_s14 = smov 0  }
   0x4 LB: > { %s861_s15 = sadd.s32 4294967295, %s1114_s14   ;;  %s862_s16 = sadd.s32 4294967294, %s1114_s14   ;;  %s1114_s14 = sphi %s1143_s14, %s15_s14   ;;  %s1110_s13 = sphi %s1141_s13, %s1586_s13   ;;  %s1106_s12 = sphi %s1139_s12, %s1585_s12   ;;  %s1102_s11 = sphi %s1137_s11, %s1584_s11   ;;  %s1098_s10 = sphi %s1135_s10, %s1583_s10   ;;  %s1094_s9 = sphi %s1133_s9, %s1582_s9  }
   0x5   : > { %s34_s17 = sadd.s32 1, %s1110_s13  ;;  %s103_s18 = sadd.s32 1, %s1102_s11 }
   0x6   : > { %p36_p0 = scmp.ge.s32.totalorder %s34_s17, 2  ;;  %p113_p1 = scmp.ne.s32.totalorder %s1102_s11, %s1098_s10 }
   0x7   : > { %p114_p2 = scmp.eq.s32.totalorder %s861_s15, 1  ;;  %p119_p3 = scmp.ne.s32.totalorder %s1098_s10, %s1094_s9 }
   0x8   : > { %s1588_s17 = smov (%p36_p0, %s34_s17), 0  ;;  %p120_p5 = scmp.eq.s32.totalorder %s862_s16, 1 }
   0x9   : > { %p1173_p4 = por %p114_p2, %p113_p1  ;;  %s98_s20 = ssub.s32 %s1110_s13, %s1588_s17 }
   0xa   : > { %p865_p6 = scmp.ge.s32.totalorder %s1114_s14, 1  ;;  %p101_p7 = scmp.eq.s32.totalorder %s98_s20, 0 }
   0xb   : > { %p1180_p8 = por %p120_p5, %p119_p3  ;;  %p164_p9 = scmp.lt.s32.totalorder %s1114_s14, 3 }
   0xc   : > { %s1186_s22 = scalar_select %p101_p7, %s1102_s11, %s103_s18  }
   0xd   : > { %p165_p10 = pnand %p865_p6, %p164_p9 }
   0xe   : > { %p200_p11 = scmp.lt.s32.totalorder (!%p165_p10), %s1106_s12, 1  ;;  %v230_v0 = vlaneseq (!%p165_p10)  ;;  %v1116_v24 = vmov (!%p165_p10), 0.0   ;;  %vm391_vm5 = vcmask (!%p165_p10), 130048  }
   0xf   : > { %168 = sbr.rel (%p165_p10) target bundleno = 352 (0x160), region = 28 }
  0x10   : > { %v1194_v1 = vshrl.u32 (!%p165_p10), %v230_v0, 7 }
  0x12   : > { %vm232_vm0 = vcmp.lt.s32.totalorder (!%p165_p10), %v1194_v1, 4  ;;  %vm301_vm14 = vcmp.eq.s32.totalorder (!%p165_p10), %v1194_v1, 0  ;;  %vm304_vm15 = vcmp.eq.s32.totalorder (!%p165_p10), %v1194_v1, 1 }
  0x16   : > { %s201_s23 = scalar_select %p200_p11, %s1106_s12, 1 }
  0x18   : > { %s903_s24 = smul.u32 48, %s201_s23 }
  0x19   : > { %s902_s25 = smul.u32 120, %s201_s23 }
  0x1a   : > { %s217_s28 = scalar_lea.vmem %s1578_s1, %s903_s24 }
  0x1b   : > { %v287_v2 = vld [vmem:[%s217_s28] sm:$0xff]  ;;  %v288_v3 = vld [vmem:[%s217_s28 + $0x8] sm:$0xff]  ;;  %v875_v4 = vld [vmem:[%s217_s28 + $0x10] sm:$0xff]  ;;  %s1199_s3 = scalar_lea.vmem %s1577_s0, %s902_s25  ;;  %s196_s25 = sand.u32 1, %s1098_s10  }
  0x1c   : > { %v876_v5 = vld [vmem:[%s217_s28 + $0x18] sm:$0xff]  ;;  %v292_v6 = vmax.f32 %v287_v2, %v875_v4  ;;  %v1201_v7 = vld [vmem:[%s217_s28 + $0x20] sm:$0xff]  ;;  %v1203_v8 = vld [vmem:[%s217_s28 + $0x28] sm:$0xff]  ;;  %s866_s27 = sshll.u32 %s196_s25, 3  ;;  %s899_s28 = sshll.u32 %s1106_s12, 7 }
  0x1d   : > { %v293_v9 = vmax.f32 %v288_v3, %v876_v5  ;;  %v224_v10 = vld [vmem:[%s1199_s3 + $0x8] sm:$0xff]  ;;  %v225_v11 = vld [vmem:[%s1199_s3 + $0x10] sm:$0xff]  ;;  %v226_v12 = vld [vmem:[%s1199_s3 + $0x18] sm:$0xff]  ;;  %s198_s29 = scalar_lea.vmem [#allocation2], %s866_s27  ;;  %s1117_s12 = smov [#allocation2]  }
  0x1e   : > { %v1209_v13 = vmax.f32 %v292_v6, %v1201_v7  ;;  %v227_v14 = vrot.slane %v224_v10, 4  ;;  %v869_v15 = vld [vmem:[%s1199_s3 + $0x30] sm:$0xff]  ;;  %v870_v16 = vld [vmem:[%s1199_s3 + $0x38] sm:$0xff]  ;;  %v871_v17 = vld [vmem:[%s1199_s3 + $0x40] sm:$0xff]  ;;  %v228_v19 = vrot.slane %v225_v11, 4  ;;  %v229_v20 = vrot.slane %v226_v12, 4 }
  0x1f   : > { %v1216_v18 = vmax.f32 %v293_v9, %v1203_v8  ;;  %v239_v21 = vrot.slane %v869_v15, 4  ;;  %v240_v22 = vrot.slane %v870_v16, 4  ;;  %v241_v23 = vrot.slane %v871_v17, 4  ;;  %v872_v30 = vld [vmem:[%s1199_s3 + $0x58] sm:$0xff]  ;;  %v873_v35 = vld [vmem:[%s1199_s3 + $0x60] sm:$0xff]  ;;  %v874_v36 = vld [vmem:[%s1199_s3 + $0x68] sm:$0xff] }
  0x20   : > { %vm313_vm1 = vcmp.ge.f32.partialorder %v287_v2, %v1209_v13  ;;  %vm456_vm2 = vcmp.ge.f32.partialorder %v875_v4, %v1209_v13  ;;  %v1247_v34 = vsel %vm232_vm0, %v227_v14, %v228_v19  ;;  %v1257_v39 = vsel %vm232_vm0, %v228_v19, %v229_v20  ;;  %s766_s30 = sshll.u32 %s198_s29, 4  ;;  %s1532_s30 = int_to_ptr.vmem [resolvable:$true] %s766_s30 }
  0x21   : > { %vm314_vm3 = vcmp.ge.f32.partialorder %v288_v3, %v1216_v18  ;;  %v1222_v25 = vsel %vm313_vm1, 1.0, %v1116_v24  ;;  %vm457_vm4 = vcmp.ge.f32.partialorder %v876_v5, %v1216_v18  ;;  %v1226_v26 = vsel %vm456_vm2, 1.0, %v1116_v24 }
  0x22   : > { %v1229_v27 = vsel %vm314_vm3, 1.0, %v1116_v24  ;;  %v1232_v28 = vsub.f32 1.0, %v1222_v25  ;;  %v1235_v29 = vsel %vm457_vm4, 1.0, %v1116_v24  ;;  %v416_v32 = vsel %vm391_vm5, %v1222_v25, 0.0 }
  0x23   : > { %v1239_v31 = vsub.f32 1.0, %v1229_v27  ;;  %v417_v33 = vsel %vm391_vm5, %v1229_v27, 0.0  ;;  %v1261_v40 = vsel %vm232_vm0, %v240_v22, %v241_v23  ;;  %v1269_v42 = vsel %vm232_vm0, %v239_v21, %v240_v22 }
  0x24   : > { %v1253_v37 = vmul.f32 %v1226_v26, %v1232_v28  ;;  %v418_v38 = vadd.f32 %v417_v33, %v416_v32  ;;  %v248_v43 = vrot.slane %v872_v30, 4  ;;  %v249_v45 = vrot.slane %v873_v35, 4 }
  0x25   : > { %v1265_v41 = vmul.f32 %v1235_v29, %v1239_v31  ;;  %v250_v46 = vrot.slane %v874_v36, 4  ;;  %v253_v47 = vmax.f32 %v1247_v34, %v1269_v42  ;;  %v254_v49 = vmax.f32 %v1257_v39, %v1261_v40 }
  0x26   : > { %v564_v44 = vsel %vm391_vm5, %v1253_v37, 0.0  ;;  %419 = vadd.xlane.f32.xlu1 %v418_v38  ;;  %v470_v50 = vand.u32 2147483647, %v1269_v42  ;;  %v1286_v53 = vsel %vm232_vm0, %v248_v43, %v249_v45  ;;  %v471_v57 = vand.u32 2147483647, %v1261_v40 }
  0x27   : > { %v565_v48 = vsel %vm391_vm5, %v1265_v41, 0.0  ;;  %v1282_v52 = vsel %vm232_vm0, %v249_v45, %v250_v46  ;;  %v255_v54 = vmax.f32 %v253_v47, %v1286_v53  ;;  %v323_v58 = vand.u32 2147483647, %v1247_v34 }
  0x28   : > { %v566_v51 = vadd.f32 %v565_v48, %v564_v44  ;;  %v256_v55 = vmax.f32 %v254_v49, %v1282_v52  ;;  %v472_v56 = vsub.f32 0.0, %v470_v50  ;;  %v324_v59 = vand.u32 2147483647, %v1257_v39 }
  0x29   : > { %v257_v60 = vsub.f32 %v1247_v34, %v255_v54  ;;  %v263_v62 = vsub.f32 %v1269_v42, %v255_v54  ;;  %v464_v2 = vsub.f32 1.0, %v1226_v26  ;;  %v269_v3 = vsub.f32 %v1286_v53, %v255_v54 }
  0x2a   : > { %567 = vadd.xlane.f32.xlu0 %v566_v51  ;;  %v258_v61 = vsub.f32 %v1257_v39, %v256_v55  ;;  %v264_v63 = vsub.f32 %v1261_v40, %v256_v55  ;;  %v270_v4 = vsub.f32 %v1282_v52, %v256_v55  ;;  %v474_v5 = vmul.f32 1.442695, %v472_v56 }
  0x2b   : > { %v259_v6 = vmul.f32 1.442695, %v257_v60  ;;  %v265_v10 = vmul.f32 1.442695, %v263_v62  ;;  %v465_v11 = vsub.f32 1.0, %v1235_v29  ;;  %v325_v14 = vsub.f32 0.0, %v323_v58 }
  0x2c   : > { %v261_v9 = vmul.f32 1.442695, %v258_v61  ;;  %v267_v12 = vmul.f32 1.442695, %v264_v63  ;;  %984 = vpow2.f32 %v474_v5  ;;  %v271_v15 = vmul.f32 1.442695, %v269_v3 }
  0x2d   : > { %986 = vpow2.f32 %v259_v6  ;;  %v473_v16 = vsub.f32 0.0, %v471_v57  ;;  %v326_v17 = vsub.f32 0.0, %v324_v59  ;;  %v273_v19 = vmul.f32 1.442695, %v270_v4 }
  0x2e   : > { %988 = vpow2.f32 %v261_v9  ;;  %v333_v20 = vmax.f32 %v1247_v34, 0.0  ;;  %vm345_vm6 = vcmp.ge.f32.partialorder %v1247_v34, 0.0  ;;  %v334_v21 = vmax.f32 %v1257_v39, 0.0 }
  0x2f   : > { %990 = vpow2.f32 %v265_v10  ;;  %v335_v22 = vmul.f32 %v1222_v25, %v1247_v34  ;;  %vm346_vm7 = vcmp.ge.f32.partialorder %v1257_v39, 0.0  ;;  %v327_v23 = vmul.f32 1.442695, %v325_v14 }
  0x30   : > { %992 = vpow2.f32 %v267_v12  ;;  %v336_v26 = vmul.f32 %v1229_v27, %v1257_v39  ;;  %v885_v29 = vsel %vm345_vm6, 1.0, %v1116_v24  ;;  %v329_v30 = vmul.f32 1.442695, %v326_v17 }
  0x31   : > { %994 = vpow2.f32 %v271_v15  ;;  %v476_v32 = vmul.f32 1.442695, %v473_v16  ;;  %v886_v33 = vsel %vm346_vm7, 1.0, %v1116_v24  ;;  %v1312_v35 = vmul.f32 %v464_v2, %v1232_v28 }
  0x32   : > { %996 = vpow2.f32 %v273_v19  ;;  %v353_v36 = vsub.f32 1.0, %v885_v29  ;;  %v1315_v34 = vmul.f32 %v465_v11, %v1239_v31  ;;  %v1317_v38 = vsub.f32 %v333_v20, %v335_v22 }
  0x33   : > { %998 = vpow2.f32 %v327_v23  ;;  %v1319_v43 = vsub.f32 %v334_v21, %v336_v26  ;;  %v351_v39 = vmul.f32 %v885_v29, %v1222_v25  ;;  %v352_v44 = vmul.f32 %v886_v33, %v1229_v27 }
  0x34   : > { %1000 = vpow2.f32 %v329_v30  ;;  %v354_v45 = vsub.f32 1.0, %v886_v33  ;;  %vm492_vm8 = vcmp.ge.f32.partialorder %v1269_v42, 0.0  ;;  %vm493_vm9 = vcmp.ge.f32.partialorder %v1261_v40, 0.0 }
  0x35   : > { %1002 = vpow2.f32 %v476_v32  ;;  %v502_v47 = vsub.f32 1.0, %v1253_v37  ;;  %v355_v49 = vmul.f32 %v353_v36, %v1232_v28  ;;  %v890_v51 = vsel %vm492_vm8, 1.0, %v1116_v24 }
  0x36   : > { %v1323_v46 = vpop.eup %984  ;;  %v891_v54 = vsel %vm493_vm9, 1.0, %v1116_v24  ;;  %v379_v56 = vmul.f32 0.25, %v1222_v25  ;;  %v380_v57 = vmul.f32 0.25, %v1229_v27  ;;  %v381_v58 = vmul.f32 0.75, %v1232_v28 }
  0x37   : > { %v1328_v48 = vpop.eup %986  ;;  %v1332_v50 = vadd.f32 1.0, %v1323_v46  ;;  %v500_v59 = vsub.f32 1.0, %v890_v51  ;;  %v356_v61 = vmul.f32 %v354_v45, %v1239_v31  ;;  %v382_v62 = vmul.f32 0.75, %v1239_v31 }
  0x38   : > { %v1336_v55 = vpop.eup %988  ;;  %v501_v63 = vsub.f32 1.0, %v891_v54  ;;  %v503_v2 = vsub.f32 1.0, %v1265_v41  ;;  %v498_v5 = vmul.f32 %v890_v51, %v1253_v37  ;;  %v357_v10 = vadd.f32 %v355_v49, %v351_v39 }
  0x39   : > { %v1341_v60 = vpop.eup %990  ;;  %v504_v6 = vmul.f32 %v502_v47, %v500_v59  ;;  %1004 = vrcp.f32 %v1332_v50  ;;  %v480_v31 = vmax.f32 %v1269_v42, 0.0  ;;  %v1361_v14 = vadd.f32 %v381_v58, %v379_v56 }
  0x3a   : > { %v1346_v3 = vpop.eup %992  ;;  %v275_v4 = vadd.f32 %v1341_v60, %v1328_v48  ;;  %1006 = vlog2.f32 %v1332_v50  ;;  %v481_v15 = vmax.f32 %v1261_v40, 0.0  ;;  %v482_v16 = vmul.f32 %v1253_v37, %v1269_v42 }
  0x3b   : > { %v1352_v28 = vpop.eup %994  ;;  %v276_v9 = vadd.f32 %v1346_v3, %v1336_v55  ;;  %v358_v19 = vadd.f32 %v356_v61, %v352_v44  ;;  %v499_v20 = vmul.f32 %v891_v54, %v1265_v41  ;;  %v505_v21 = vmul.f32 %v503_v2, %v501_v63 }
  0x3c   : > { %v1358_v11 = vpop.eup %996  ;;  %v277_v12 = vadd.f32 %v1352_v28, %v275_v4  ;;  %v483_v23 = vmul.f32 %v1265_v41, %v1261_v40  ;;  %v506_v26 = vadd.f32 %v504_v6, %v498_v5  ;;  %v508_v29 = vsub.f32 1.0, %v1323_v46 }
  0x3d   : > { %v278_v17 = vadd.f32 %v1358_v11, %v276_v9  ;;  %v999_v22 = vpop.eup %998  ;;  %v528_v42 = vmul.f32 0.25, %v1253_v37  ;;  %v530_v33 = vmul.f32 0.75, %v502_v47  ;;  %v1376_v44 = vadd.f32 %v382_v62, %v380_v57 }
  0x3e   : > { %1008 = vrcp.f32 %v277_v12  ;;  %v1001_v30 = vpop.eup %1000  ;;  %v1371_v32 = vadd.f32 1.0, %v999_v22  ;;  %v484_v45 = vsub.f32 %v480_v31, %v482_v16  ;;  %v529_v49 = vmul.f32 0.25, %v1265_v41 }
  0x3f   : > { %1010 = vrcp.f32 %v278_v17  ;;  %v1003_v36 = vpop.eup %1002  ;;  %v1374_v39 = vadd.f32 1.0, %v1001_v30  ;;  %v507_v40 = vadd.f32 %v505_v21, %v499_v20  ;;  %v531_v54 = vmul.f32 0.75, %v503_v2 }
  0x40   : > { %1012 = vlog2.f32 %v1371_v32  ;;  %v509_v51 = vsub.f32 1.0, %v1003_v36  ;;  %v359_v56 = vsub.f32 1.0, %v999_v22  ;;  %v1381_v58 = vsub.f32 %v481_v15, %v483_v23 }
  0x41   : > { %1014 = vlog2.f32 %v1374_v39  ;;  %v510_v59 = vmul.f32 %v508_v29, %v506_v26  ;;  %v360_v47 = vsub.f32 1.0, %v1001_v30  ;;  %v1384_v61 = vadd.f32 %v530_v33, %v528_v42 }
  0x42   : > { %1016 = vrcp.f32 %v1371_v32  ;;  %vm604_vm10 = vcmp.ge.f32.partialorder %v1201_v7, %v1209_v13  ;;  %v1389_v62 = vadd.f32 1.0, %v1003_v36  ;;  %vm605_vm11 = vcmp.ge.f32.partialorder %v1203_v8, %v1216_v18 }
  0x43   : > { %v1005_v57 = vpop.eup %1004  ;;  %1018 = vrcp.f32 %v1374_v39  ;;  %v614_v63 = vand.u32 2147483647, %v1286_v53  ;;  %v511_v4 = vmul.f32 %v509_v51, %v507_v40  ;;  %v1395_v6 = vadd.f32 %v531_v54, %v529_v49 }
  0x44   : > { %v1007_v2 = vpop.eup %1006  ;;  %v516_v5 = vmul.f32 %v1005_v57, %v1332_v50  ;;  %v615_v9 = vand.u32 2147483647, %v1282_v52  ;;  %v361_v31 = vmul.f32 %v359_v56, %v357_v10  ;;  %1020 = vlog2.f32 %v1389_v62 }
  0x45   : > { %v512_v15 = vadd.f32 %v1323_v46, %v510_v59  ;;  %v616_v16 = vsub.f32 0.0, %v614_v63  ;;  %v362_v20 = vmul.f32 %v360_v47, %v358_v19  ;;  %v893_v23 = vsel %vm604_vm10, 1.0, %v1116_v24 }
  0x46   : > { %v518_v21 = vsub.f32 2.0, %v516_v5  ;;  %v617_v26 = vsub.f32 0.0, %v615_v9  ;;  %v487_v50 = vmul.f32 0.6931472, %v1007_v2  ;;  %1022 = vrcp.f32 %v1389_v62 }
  0x47   : > { %v894_v10 = vsel %vm605_vm11, 1.0, %v1116_v24  ;;  %v618_v42 = vmul.f32 1.442695, %v616_v16  ;;  %v1409_v19 = vadd.f32 %v1003_v36, %v511_v4  ;;  %v1411_v7 = vadd.f32 %v999_v22, %v361_v31 }
  0x48   : > { %v1009_v29 = vpop.eup %1008  ;;  %v520_v49 = vmul.f32 %v1005_v57, %v518_v21  ;;  %v620_v40 = vmul.f32 1.442695, %v617_v26  ;;  %vm636_vm12 = vcmp.ge.f32.partialorder %v1286_v53, 0.0  ;;  %vm637_vm13 = vcmp.ge.f32.partialorder %v1282_v52, 0.0 }
  0x49   : > { %v1011_v46 = vpop.eup %1010  ;;  %v281_v33 = vmul.f32 %v1009_v29, %v277_v12  ;;  %v1416_v8 = vmul.f32 %v893_v23, %v1312_v35  ;;  %v1419_v18 = vmul.f32 %v894_v10, %v1315_v34  ;;  %v364_v59 = vadd.f32 %v1001_v30, %v362_v20 }
  0x4a   : > { %v282_v51 = vmul.f32 %v1011_v46, %v278_v17  ;;  %v1013_v13 = vpop.eup %1012  ;;  %v522_v56 = vmul.f32 %v520_v49, %v512_v15  ;;  %v490_v47 = vadd.f32 %v487_v50, %v484_v45  ;;  %1024 = vpow2.f32 %v618_v42 }
  0x4b   : > { %v283_v54 = vsub.f32 2.0, %v281_v33  ;;  %v1015_v12 = vpop.eup %1014  ;;  %1026 = vpow2.f32 %v620_v40  ;;  %v1422_v57 = vsel %vm636_vm12, 1.0, %v1116_v24  ;;  %v1425_v63 = vsel %vm637_vm13, 1.0, %v1116_v24 }
  0x4c   : > { %v284_v36 = vsub.f32 2.0, %v282_v51  ;;  %v1017_v17 = vpop.eup %1016  ;;  %v340_v4 = vmul.f32 0.6931472, %v1013_v13  ;;  %v342_v5 = vmul.f32 0.6931472, %v1015_v12  ;;  %v524_v34 = vsub.f32 1.0, %v522_v56 }
  0x4d   : > { %v285_v22 = vmul.f32 %v1009_v29, %v283_v54  ;;  %v1019_v2 = vpop.eup %1018  ;;  %v367_v31 = vmul.f32 %v1017_v17, %v1371_v32  ;;  %vm307_vm0 = vcmp.eq.s32.totalorder %v1194_v1, 2  ;;  %vm310_vm1 = vcmp.eq.s32.totalorder %v1194_v1, 3 }
  0x4e   : > { %v286_v35 = vmul.f32 %v1011_v46, %v284_v36  ;;  %v1021_v15 = vpop.eup %1020  ;;  %v368_v23 = vmul.f32 %v1019_v2, %v1374_v39 }
  0x4f   : > { %v468_v9 = vmul.f32 %v1341_v60, %v285_v22  ;;  %v321_v30 = vmul.f32 %v1328_v48, %v285_v22  ;;  %v612_v45 = vmul.f32 %v1352_v28, %v285_v22  ;;  %v369_v33 = vsub.f32 2.0, %v367_v31 }
  0x50   : > { %v469_v16 = vmul.f32 %v1346_v3, %v286_v35  ;;  %v322_v20 = vmul.f32 %v1336_v55, %v286_v35  ;;  %v613_v21 = vmul.f32 %v1358_v11, %v286_v35  ;;  %v1023_v28 = vpop.eup %1022  ;;  %v370_v49 = vsub.f32 2.0, %v368_v23 }
  0x51   : > { %v552_v26 = vsel %vm391_vm5, %v468_v9, 0.0  ;;  %v404_v29 = vsel %vm391_vm5, %v321_v30, 0.0  ;;  %v696_v60 = vsel %vm391_vm5, %v612_v45, 0.0  ;;  %v389_v48 = vmul.f32 %v1222_v25, %v321_v30 }
  0x52   : > { %v553_v32 = vsel %vm391_vm5, %v469_v16, 0.0  ;;  %v405_v50 = vsel %vm391_vm5, %v322_v20, 0.0  ;;  %v697_v3 = vsel %vm391_vm5, %v613_v21, 0.0  ;;  %v390_v55 = vmul.f32 %v1229_v27, %v322_v20 }
  0x53   : > { %v554_v11 = vadd.f32 %v553_v32, %v552_v26  ;;  %v406_v10 = vadd.f32 %v405_v50, %v404_v29  ;;  %v698_v39 = vadd.f32 %v697_v3, %v696_v60  ;;  %v392_v42 = vsel %vm391_vm5, %v389_v48, 0.0 }
  0x54   : > { %v393_v46 = vsel %vm391_vm5, %v390_v55, 0.0  ;;  %v538_v25 = vmul.f32 %v468_v9, %v1253_v37  ;;  %v539_v51 = vmul.f32 %v469_v16, %v1265_v41  ;;  %v489_v13 = vmul.f32 0.6931472, %v1021_v15  ;;  %v1448_v27 = vpop.eup %1024 }
  0x55   : > { %555 = vadd.xlane.f32.xlu1 %v554_v11  ;;  %407 = vadd.xlane.f32.xlu0 %v406_v10  ;;  %v394_v40 = vadd.f32 %v393_v46, %v392_v42  ;;  %v517_v54 = vmul.f32 %v1023_v28, %v1389_v62  ;;  %v371_v56 = vmul.f32 %v1017_v17, %v369_v33  ;;  %v1451_v35 = vpop.eup %1026  ;;  %v622_v20 = vadd.f32 1.0, %v1448_v27 }
  0x56   : > { %v372_v12 = vmul.f32 %v1019_v2, %v370_v49  ;;  %v540_v36 = vsel %vm391_vm5, %v538_v25, 0.0  ;;  %v526_v22 = vmul.f32 %v524_v34, %v524_v34  ;;  %v541_v30 = vsel %vm391_vm5, %v539_v51, 0.0 }
  0x57   : > { %v519_v37 = vsub.f32 2.0, %v517_v54  ;;  %v682_v9 = vmul.f32 %v612_v45, %v1416_v8  ;;  %v683_v31 = vmul.f32 %v613_v21, %v1419_v18  ;;  %v343_v41 = vadd.f32 %v340_v4, %v1317_v38 }
  0x58   : > { %v344_v62 = vadd.f32 %v342_v5, %v1319_v43  ;;  %v373_v15 = vmul.f32 %v371_v56, %v1411_v7  ;;  %v374_v17 = vmul.f32 %v372_v12, %v364_v59  ;;  %v542_v2 = vadd.f32 %v541_v30, %v540_v36 }
  0x59   : > { %699 = vadd.xlane.f32.xlu1 %v698_v39  ;;  %395 = vadd.xlane.f32.xlu0 %v394_v40  ;;  %v521_v34 = vmul.f32 %v1023_v28, %v519_v37  ;;  %v534_v16 = vmul.f32 %v526_v22, %v490_v47  ;;  %v684_v45 = vsel %vm391_vm5, %v682_v9, 0.0  ;;  %v685_v21 = vsel %vm391_vm5, %v683_v31, 0.0 }
  0x5a   : > { %v375_v23 = vsub.f32 1.0, %v373_v15  ;;  %v376_v26 = vsub.f32 1.0, %v374_v17  ;;  %v623_v43 = vadd.f32 1.0, %v1451_v35  ;;  %v644_v7 = vsub.f32 1.0, %v1422_v57 }
  0x5b   : > { %v523_v38 = vmul.f32 %v521_v34, %v1409_v19  ;;  %v646_v59 = vsub.f32 1.0, %v1416_v8  ;;  %v645_v47 = vsub.f32 1.0, %v1425_v63  ;;  %v647_v29 = vsub.f32 1.0, %v1419_v18 }
  0x5c   : > { %v377_v4 = vmul.f32 %v375_v23, %v375_v23  ;;  %v378_v5 = vmul.f32 %v376_v26, %v376_v26  ;;  %v491_v60 = vadd.f32 %v489_v13, %v1381_v58  ;;  %v686_v28 = vadd.f32 %v685_v21, %v684_v45 }
  0x5d   : > { %543 = vadd.xlane.f32.xlu0 %v542_v2  ;;  %v525_v48 = vsub.f32 1.0, %v523_v38  ;;  %v642_v19 = vmul.f32 %v1422_v57, %v1416_v8  ;;  %v536_v3 = vmul.f32 %v534_v16, %v1384_v61  ;;  %1028 = vrcp.f32 %v622_v20 }
  0x5e   : > { %v385_v32 = vmul.f32 %v377_v4, %v343_v41  ;;  %v386_v50 = vmul.f32 %v378_v5, %v344_v62  ;;  %v643_v11 = vmul.f32 %v1425_v63, %v1419_v18  ;;  %v648_v10 = vmul.f32 %v646_v59, %v644_v7 }
  0x5f   : > { %v527_v55 = vmul.f32 %v525_v48, %v525_v48  ;;  %1030 = vrcp.f32 %v623_v43  ;;  %v649_v57 = vmul.f32 %v647_v29, %v645_v47  ;;  %v576_v63 = vsel %vm391_vm5, %v536_v3, 0.0 }
  0x60   : > { %v387_v58 = vmul.f32 %v385_v32, %v1361_v14  ;;  %v388_v39 = vmul.f32 %v386_v50, %v1376_v44  ;;  %1032 = vlog2.f32 %v622_v20  ;;  %v708_v33 = vsel %vm391_vm5, %v1416_v8, 0.0 }
  0x61   : > { %v535_v42 = vmul.f32 %v527_v55, %v491_v60  ;;  %687 = vadd.xlane.f32.xlu0 %v686_v28  ;;  %1034 = vlog2.f32 %v623_v43  ;;  %v650_v44 = vadd.f32 %v648_v10, %v642_v19  ;;  %v652_v25 = vsub.f32 1.0, %v1448_v27 }
  0x62   : > { %v428_v61 = vsel %vm391_vm5, %v387_v58, 0.0  ;;  %v429_v46 = vsel %vm391_vm5, %v388_v39, 0.0  ;;  %v651_v40 = vadd.f32 %v649_v57, %v643_v11  ;;  %v653_v51 = vsub.f32 1.0, %v1451_v35 }
  0x63   : > { %v430_v49 = vadd.f32 %v429_v46, %v428_v61  ;;  %v537_v14 = vmul.f32 %v535_v42, %v1395_v6  ;;  %v709_v13 = vsel %vm391_vm5, %v1419_v18, 0.0  ;;  %v654_v36 = vmul.f32 %v652_v25, %v650_v44 }
  0x64   : > { %v710_v56 = vadd.f32 %v709_v13, %v708_v33  ;;  %v655_v30 = vmul.f32 %v653_v51, %v651_v40  ;;  %v624_v6 = vmax.f32 %v1286_v53, 0.0  ;;  %v626_v9 = vmul.f32 %v1416_v8, %v1286_v53 }
  0x65   : > { %431 = vadd.xlane.f32.xlu1 %v430_v49  ;;  %v577_v54 = vsel %vm391_vm5, %v537_v14, 0.0  ;;  %v625_v62 = vmax.f32 %v1282_v52, 0.0  ;;  %v627_v15 = vmul.f32 %v1419_v18, %v1282_v52  ;;  %v656_v34 = vadd.f32 %v1448_v27, %v654_v36 }
  0x66   : > { %v578_v12 = vadd.f32 %v577_v54, %v576_v63  ;;  %711 = vadd.xlane.f32.xlu0 %v710_v56  ;;  %v657_v23 = vadd.f32 %v1451_v35, %v655_v30  ;;  %v628_v45 = vsub.f32 %v624_v6, %v626_v9  ;;  %v672_v5 = vmul.f32 0.25, %v1416_v8 }
  0x67   : > { %v1029_v22 = vpop.eup %1028  ;;  %v629_v7 = vsub.f32 %v625_v62, %v627_v15  ;;  %v674_v52 = vmul.f32 0.75, %v646_v59  ;;  %v673_v47 = vmul.f32 0.25, %v1419_v18  ;;  %v675_v27 = vmul.f32 0.75, %v647_v29 }
  0x68   : > { %v660_v31 = vmul.f32 %v1029_v22, %v622_v20 }
  0x69   : > { %v1031_v37 = vpop.eup %1030  ;;  %579 = vadd.xlane.f32.xlu1 %v578_v12  ;;  %v676_v32 = vadd.f32 %v674_v52, %v672_v5  ;;  %v677_v3 = vadd.f32 %v675_v27, %v673_v47 }
  0x6a   : > { %v1033_v41 = vpop.eup %1032  ;;  %v661_v17 = vmul.f32 %v1031_v37, %v623_v43  ;;  %v662_v16 = vsub.f32 2.0, %v660_v31 }
  0x6b   : > { %v1035_v2 = vpop.eup %1034  ;;  %v631_v21 = vmul.f32 0.6931472, %v1033_v41 }
  0x6c   : > { %v663_v26 = vsub.f32 2.0, %v661_v17  ;;  %v664_v38 = vmul.f32 %v1029_v22, %v662_v16  ;;  %v633_v53 = vmul.f32 0.6931472, %v1035_v2 }
  0x6d   : > { %v634_v35 = vadd.f32 %v631_v21, %v628_v45 }
  0x6e   : > { %v665_v20 = vmul.f32 %v1031_v37, %v663_v26  ;;  %v666_v4 = vmul.f32 %v664_v38, %v656_v34  ;;  %v635_v48 = vadd.f32 %v633_v53, %v629_v7 }
  0x70   : > { %v667_v43 = vmul.f32 %v665_v20, %v657_v23  ;;  %v668_v60 = vsub.f32 1.0, %v666_v4 }
  0x72   : > { %v669_v28 = vsub.f32 1.0, %v667_v43  ;;  %v670_v19 = vmul.f32 %v668_v60, %v668_v60 }
  0x74   : > { %v671_v50 = vmul.f32 %v669_v28, %v669_v28  ;;  %v678_v55 = vmul.f32 %v670_v19, %v634_v35 }
  0x76   : > { %v679_v11 = vmul.f32 %v671_v50, %v635_v48  ;;  %v680_v10 = vmul.f32 %v678_v55, %v676_v32 }
  0x78   : > { %v681_v58 = vmul.f32 %v679_v11, %v677_v3  ;;  %v720_v8 = vsel %vm391_vm5, %v680_v10, 0.0 }
  0x7a   : > { %v721_v59 = vsel %vm391_vm5, %v681_v58, 0.0 }
  0x7b   : > { %v722_v39 = vadd.f32 %v721_v59, %v720_v8 }
  0x7d   : > { %723 = vadd.xlane.f32.xlu1 %v722_v39 }
  0xb3   : > { %v420_v18 = vpop.xlane.xlu1 %419 }
  0xb4   : > { %v421_v57 = vrot.slane %v420_v18, 4 }
  0xb6   : > { %v422_v61 = vadd.f32 %v421_v57, %v420_v18 }
  0xb7   : > { %v568_v29 = vpop.xlane.xlu0 %567 }
  0xb8   : > { %v423_v14 = vrot.slane %v422_v61, 2  ;;  %v569_v22 = vrot.slane %v568_v29, 4 }
  0xba   : > { %v424_v36 = vadd.f32 %v423_v14, %v422_v61  ;;  %v570_v34 = vadd.f32 %v569_v22, %v568_v29 }
  0xbc   : > { %v425_v2 = vrot.slane %v424_v36, 1  ;;  %v571_v4 = vrot.slane %v570_v34, 2 }
  0xbe   : > { %v426_v20 = vadd.f32 %v425_v2, %v424_v36  ;;  %v572_v3 = vadd.f32 %v571_v4, %v570_v34 }
  0xe2   : > { %v408_v42 = vpop.xlane.xlu0 %407  ;;  %v556_v33 = vpop.xlane.xlu1 %555 }
  0xe3   : > { %v409_v46 = vrot.slane %v408_v42, 4  ;;  %v557_v51 = vrot.slane %v556_v33, 4 }
  0xe5   : > { %v410_v63 = vadd.f32 %v409_v46, %v408_v42  ;;  %v558_v9 = vadd.f32 %v557_v51, %v556_v33  ;;  %v573_v42 = vrot.slane %v572_v3, 1 }
  0xe6   : > { %v396_v49 = vpop.xlane.xlu0 %395  ;;  %v700_v30 = vpop.xlane.xlu1 %699 }
  0xe7   : > { %v411_v44 = vrot.slane %v410_v63, 2  ;;  %v397_v25 = vrot.slane %v396_v49, 4  ;;  %v701_v62 = vrot.slane %v700_v30, 4  ;;  %v559_v45 = vrot.slane %v558_v9, 2 }
  0xe9   : > { %v398_v40 = vadd.f32 %v397_v25, %v396_v49  ;;  %v412_v54 = vadd.f32 %v411_v44, %v410_v63  ;;  %v702_v7 = vadd.f32 %v701_v62, %v700_v30  ;;  %v560_v60 = vadd.f32 %v559_v45, %v558_v9 }
  0xea   : > { %v544_v13 = vpop.xlane.xlu0 %543  ;;  %v574_v25 = vadd.f32 %v573_v42, %v572_v3  ;;  %v881_v45 = vsel %vm307_vm0, 1.0, %v1116_v24 }
  0xeb   : > { %v399_v56 = vrot.slane %v398_v40, 2  ;;  %v545_v12 = vrot.slane %v544_v13, 4  ;;  %v413_v41 = vrot.slane %v412_v54, 1  ;;  %v703_v48 = vrot.slane %v702_v7, 2 }
  0xec   : > { %v561_v8 = vrot.slane %v560_v60, 1 }
  0xed   : > { %v546_v37 = vadd.f32 %v545_v12, %v544_v13  ;;  %v400_v6 = vadd.f32 %v399_v56, %v398_v40  ;;  %v414_v38 = vadd.f32 %v413_v41, %v412_v54  ;;  %v704_v29 = vadd.f32 %v703_v48, %v702_v7 }
  0xee   : > { %v688_v31 = vpop.xlane.xlu0 %687  ;;  %v562_v49 = vadd.f32 %v561_v8, %v560_v60  ;;  %v879_v41 = vsel %vm301_vm14, 1.0, %v1116_v24 }
  0xef   : > { %v689_v15 = vrot.slane %v688_v31, 4  ;;  %v401_v17 = vrot.slane %v400_v6, 1  ;;  %v547_v16 = vrot.slane %v546_v37, 2  ;;  %v705_v44 = vrot.slane %v704_v29, 1 }
  0xf1   : > { %v690_v23 = vadd.f32 %v689_v15, %v688_v31  ;;  %v402_v26 = vadd.f32 %v401_v17, %v400_v6  ;;  %v548_v43 = vadd.f32 %v547_v16, %v546_v37  ;;  %v706_v54 = vadd.f32 %v705_v44, %v704_v29 }
  0xf2   : > { %v432_v21 = vpop.xlane.xlu1 %431  ;;  %v880_v15 = vsel %vm304_vm15, 1.0, %v1116_v24 }
  0xf3   : > { %v433_v53 = vrot.slane %v432_v21, 4  ;;  %904 = vpush %v402_v26  ;;  %v691_v5 = vrot.slane %v690_v23, 2  ;;  %v712_v52 = vpop.xlane.xlu0 %711  ;;  %v549_v50 = vrot.slane %v548_v43, 1 }
  0xf4   : > { %906 = vpush %v414_v38  ;;  %v713_v27 = vrot.slane %v712_v52, 4 }
  0xf5   : > { %v434_v47 = vadd.f32 %v433_v53, %v432_v21  ;;  %908 = vpush %v426_v20  ;;  %v692_v55 = vadd.f32 %v691_v5, %v690_v23  ;;  %v550_v57 = vadd.f32 %v549_v50, %v548_v43  ;;  %v300_v5 = vand.u32 127, %v230_v0 }
  0xf6   : > { %v580_v35 = vpop.xlane.xlu1 %579  ;;  %v714_v32 = vadd.f32 %v713_v27, %v712_v52 }
  0xf7   : > { %v435_v28 = vrot.slane %v434_v47, 2  ;;  %v581_v19 = vrot.slane %v580_v35, 4  ;;  %v693_v61 = vrot.slane %v692_v55, 1  ;;  %vm588_vm2 = vcmp.eq.s32.totalorder %v300_v5, 1 }
  0xf8   : > { %v715_v10 = vrot.slane %v714_v32, 2  ;;  %vm440_vm3 = vcmp.eq.s32.totalorder %v300_v5, 0  ;;  %v892_v0 = vsel %vm588_vm2, 1.0, %v1116_v24  ;;  %vm732_vm4 = vcmp.eq.s32.totalorder %v300_v5, 2 }
  0xf9   : > { %v582_v11 = vadd.f32 %v581_v19, %v580_v35  ;;  %v436_v58 = vadd.f32 %v435_v28, %v434_v47  ;;  %v694_v40 = vadd.f32 %v693_v61, %v692_v55  ;;  %v882_v47 = vsel %vm310_vm1, 1.0, %v1116_v24 }
  0xfa   : > { %v716_v39 = vadd.f32 %v715_v10, %v714_v32 }
  0xfb   : > { %v583_v59 = vrot.slane %v582_v11, 2  ;;  %v437_v18 = vrot.slane %v436_v58, 1 }
  0xfc   : > { %v717_v33 = vrot.slane %v716_v39, 1 }
  0xfd   : > { %v438_v46 = vadd.f32 %v437_v18, %v436_v58  ;;  %v584_v63 = vadd.f32 %v583_v59, %v582_v11  ;;  %v887_v58 = vsel %vm440_vm3, 1.0, %v1116_v24  ;;  %v897_v18 = vsel %vm732_vm4, 1.0, %v1116_v24 }
  0xfe   : > { %v718_v13 = vadd.f32 %v717_v33, %v716_v39 }
  0xff   : > { %910 = vpush %v438_v46  ;;  %v585_v14 = vrot.slane %v584_v63, 1 }
 0x100   : > { %912 = vpush %v550_v57 }
 0x101   : > { %914 = vpush %v562_v49  ;;  %v586_v51 = vadd.f32 %v585_v14, %v584_v63 }
 0x102   : > { %916 = vpush %v574_v25 }
 0x103   : > { %918 = vpush %v586_v51 }
 0x104   : > { %920 = vpush %v694_v40 }
 0x105   : > { %922 = vpush %v706_v54 }
 0x106   : > { %924 = vpush %v718_v13 }
 0x10a   : > { %v724_v56 = vpop.xlane.xlu1 %723 }
 0x10b   : > { %v725_v12 = vrot.slane %v724_v56, 4 }
 0x10d   : > { %v726_v36 = vadd.f32 %v725_v12, %v724_v56 }
 0x10f   : > { %v727_v22 = vrot.slane %v726_v36, 2 }
 0x111   : > { %v728_v30 = vadd.f32 %v727_v22, %v726_v36 }
 0x113   : > { %v729_v37 = vrot.slane %v728_v30, 1 }
 0x115   : > { %v730_v6 = vadd.f32 %v729_v37, %v728_v30 }
 0x117   : > { %926 = vpush %v730_v6 }
 0x124   : > { %s905_s4 = spop %904 }
 0x125   : > { %s907_s5 = spop %906  ;;  %v443_v62 = vstv %s905_s4 }
 0x126   : > { %s1507_s6 = spop %908  ;;  %v445_v17 = vstv %s907_s5  ;;  %v444_v16 = vmul.f32 %v879_v41, %v443_v62  ;;  %s1530_s5 = scalar_lea.hbm %s1579_s2, %s899_s28 }
 0x127   : > { %v446_v23 = vmul.f32 %v880_v15, %v445_v17  ;;  %v448_v21 = vstv %s1507_s6  ;;  %s752_s6 = scalar_lea.sflag [#allocation3], %s196_s25 }
 0x128   : > { %v449_v43 = vmul.f32 %v881_v45, %v448_v21 }
 0x129   : > { %v447_v4 = vadd.f32 %v446_v23, %v444_v16 }
 0x12b   : > { %v450_v1 = vadd.f32 %v449_v43, %v447_v4 }
 0x130   : > { %s1509_s7 = spop %910 }
 0x131   : > { %s913_s8 = spop %912  ;;  %v451_v27 = vstv %s1509_s7  ;;  %s1036_s7 = scalar_lea.vmem %s1532_s30, 128 }
 0x132   : > { %s915_s15 = spop %914  ;;  %v591_v9 = vstv %s913_s8  ;;  %v452_v32 = vmul.f32 %v882_v47, %v451_v27  ;;  %p1037_p12 = scmp.ne.s32.totalorder %s1532_s30, %s1036_s7 }
 0x133   : > { %v593_v31 = vstv %s915_s15  ;;  %s917_s16 = spop %916  ;;  %v592_v2 = vmul.f32 %v879_v41, %v591_v9  ;;  %s1040_s8 = sshll.u32 %s1117_s12, 4  ;;  %s1041_s8 = int_to_ptr.vmem [resolvable:$false] %s1040_s8 }
 0x134   : > { %s919_s18 = spop %918  ;;  %v594_v34 = vmul.f32 %v880_v15, %v593_v31  ;;  %v596_v26 = vstv %s917_s16  ;;  %v453_v11 = vadd.f32 %v452_v32, %v450_v1  ;;  %p1038_p13 = pnand %p1037_p12, %p1173_p4 }
 0x135   : > { %s921_s20 = spop %920  ;;  %v599_v7 = vstv %s919_s18  ;;  %v597_v52 = vmul.f32 %v881_v45, %v596_v26  ;;  %s1042_s15 = scalar_lea.vmem %s1041_s8, 256 }
 0x136   : > { %s923_s23 = spop %922  ;;  %v595_v38 = vadd.f32 %v594_v34, %v592_v2  ;;  %v735_v53 = vstv %s921_s20  ;;  %v600_v48 = vmul.f32 %v882_v47, %v599_v7  ;;  %v454_v29 = vmul.f32 %v887_v58, %v453_v11  ;;  %p1039_p0 = pneg %p1038_p13 }
 0x137   : > { %s925_s24 = spop %924  ;;  %v737_v20 = vstv %s923_s23  ;;  %v736_v28 = vmul.f32 %v879_v41, %v735_v53  ;;  %p1043_p1 = scmp.lt.s32.totalorder %s1532_s30, %s1041_s8 }
 0x138   : > { %v740_v35 = vstv %s925_s24  ;;  %v598_v60 = vadd.f32 %v597_v52, %v595_v38  ;;  %v738_v19 = vmul.f32 %v880_v15, %v737_v20  ;;  %p1044_p2 = scmp.lt.s32.totalorder %s1042_s15, %s1036_s7 }
 0x139   : > { %v741_v50 = vmul.f32 %v881_v45, %v740_v35 }
 0x13a   : > { %v601_v3 = vadd.f32 %v600_v48, %v598_v60  ;;  %v739_v55 = vadd.f32 %v738_v19, %v736_v28  ;;  %p1045_p3 = por %p1044_p2, %p1043_p1 }
 0x13c   : > { %v742_v10 = vadd.f32 %v741_v50, %v739_v55  ;;  %v602_v59 = vmul.f32 %v892_v0, %v601_v3  ;;  %p1046_p5 = pnand %p1045_p3, %p1039_p0 }
 0x13e   : > { %v603_v42 = vadd.f32 %v602_v59, %v454_v29 }
 0x148   : > { %s927_s26 = spop %926 }
 0x149   : > { %v743_v8 = vstv %s927_s26 }
 0x14a   : > { %v744_v39 = vmul.f32 %v882_v47, %v743_v8 }
 0x14c   : > { %v745_v57 = vadd.f32 %v744_v39, %v742_v10 }
 0x14e   : > { %v746_v61 = vmul.f32 %v897_v18, %v745_v57 }
 0x150   : > { %v747_v46 = vadd.f32 %v746_v61, %v603_v42 }
 0x152   : > { %750 = vst [vmem:[%s198_s29] sm:$0xff] %v747_v46 }
 0x153   : > { %1049 = shalt.err (!%p1046_p5)
}
 0x154   : > { %s1050_s16 = scalar_lea.hbm %s1530_s5, 128  ;;  %s1054_s23 = scalar_lea.hbm %s1579_s2, 256 }
 0x155   : > { %p1051_p6 = scmp.ne.s32.totalorder %s1530_s5, %s1050_s16  ;;  %p1055_p10 = scmp.lt.u32.totalorder %s1530_s5, %s1579_s2 }
 0x156   : > { %p1056_p11 = scmp.lt.u32.totalorder %s1054_s23, %s1050_s16  ;;  %p1058_p13 = scmp.lt.u32.totalorder %s1050_s16, %s1530_s5 }
 0x157   : > { %p1052_p7 = pnand %p1051_p6, %p1173_p4 }
 0x158   : > { %p1057_p12 = por %p1056_p11, %p1055_p10 }
 0x159   : > { %p1053_p9 = pneg %p1052_p7 }
 0x15a   : > { %p1059_p0 = por %p1058_p13, %p1057_p12 }
 0x15c   : > { %p1060_p1 = pnand %p1059_p0, %p1053_p9 }
 0x15e   : > { %1063 = shalt.err (!%p1060_p1)
}
 0x15f   : > { %928 = dma.vmem_to_hbm [thread:$0]  (%p1173_p4), %s1532_s30, 128, %s1530_s5, %s752_s6  }
 0x160 PF: > { %p934_p2 = scmp.ge.s32.totalorder %s1114_s14, 2  ;;  %s778_s26 = sand.u32 1, %s1094_s9  }
 0x161   : > { %s779_s27 = scalar_lea.sflag [#allocation3], %s778_s26 }
 0x162   : > { %p931_p3 = pnand %p934_p2, %p1180_p8 }
 0x164   : > { %1089 = dma.done.wait (!%p931_p3), %s779_s27, 128  }
 0x165   : > { %1091 = vsyncadd (!%p931_p3), %s779_s27, 4294967168  ;;  %s15_s14 = sadd.s32 1, %s1114_s14   ;;  %s1582_s9 = smov %s1098_s10 }
 0x166   : > { %p12_p5 = scmp.ge.s32.totalorder %s15_s14, 4   ;;  %s1583_s10 = smov %s1102_s11 }
 0x167   : > { %s1584_s11 = smov %s1186_s22  ;;  %s1585_s12 = smov %s1110_s13 }
 0x168   : > { %s1586_s13 = smov %s1588_s17  ;;  %14 = sbr.rel (!%p12_p5) target bundleno = 4 (0x4), region = 74 }
 0x16f   :  { %784 = vsyncpa [#allocation3], 1 }
 0x170   :  { %786 = vsyncpa [#allocation3 + $0x1], 1 }

</bundles_post_ra>
